<compile_context>
chip_gen: v7x
topology: tpu7x:2x2x1
jax: 0.10.0
libtpu: 0.0.40
codegen_flags: <defaults>
</compile_context>

<pallas_src>
import functools

import jax
import jax.numpy as jnp
from jax import lax
from jax.experimental import pallas as pl
from jax.experimental.pallas import tpu as pltpu

EMBED_MAX_NORM = 1.0

# ---- model dims (small, deterministic synthetic config) ----
VOCAB = 200      # vocab_size (not a multiple of 128 -> exercises vocab padding)
DIM = 32         # embedding_dim
BATCH = 8        # batch size
CTX = 6          # context window length (ids summed per example)

MAX_TILE_V = 8192   # vocab tile upper bound (>= 8k amortizes per-step overhead)
LANE_MULT = 256     # multiple of 256 (v6e/v7x MXU) and of 128 (v5e MXU / lanes)


def _round_up(x, m):
    return ((x + m - 1) // m) * m


def _choose_tile_v(vocab):
    return min(MAX_TILE_V, _round_up(vocab, LANE_MULT))


def _cbow_kernel(ids_ref, embed_ref, wT_ref, bias_ref, out_ref, x_ref, *,
                 batch, ctx):
    """One vocab tile of the forward.

    ids_ref   : SMEM (batch*ctx,) int32      scalar-prefetched context ids
    embed_ref : VMEM (V, D) f32              embedding table (whole-array resident)
    wT_ref    : VMEM (D, TILE_V) f32/bf16    pre-transposed linear weight tile
    bias_ref  : VMEM (1, TILE_V) f32         linear bias tile
    out_ref   : VMEM (B, TILE_V) f32         logits tile (lane-dense store)
    x_ref     : VMEM (B, D) f32 scratch      summed (renormed) context embeddings
    """
    d = embed_ref.shape[1]
    max_sq = jnp.float32(EMBED_MAX_NORM * EMBED_MAX_NORM)

    # Gather the batch*ctx rows, max_norm-renorm each, sum over the context.
    # O(B*C*D) VPU/EUP work; recomputed per vocab tile so tiles stay
    # independent (lets the grid axis be "parallel" across TensorCores).
    for b in range(batch):
        acc = jnp.zeros((1, d), jnp.float32)
        for c in range(ctx):
            idx = ids_ref[b * ctx + c]
            row = embed_ref[pl.ds(idx, 1), :].astype(jnp.float32)      # (1, D)
            sq = jnp.sum(row * row, axis=-1, keepdims=True)
            scale = jnp.where(sq > max_sq,
                              EMBED_MAX_NORM * lax.rsqrt(sq),
                              jnp.float32(1.0))
            acc = acc + row * scale
        x_ref[b:b + 1, :] = acc

    # Linear tile: (B, D) @ (D, TILE_V) on the MXU, f32 accumulation.
    x = x_ref[...].astype(wT_ref.dtype)
    logits = jnp.dot(x, wT_ref[...], preferred_element_type=jnp.float32)
    out_ref[...] = logits + bias_ref[...]


def prepare_cbow_params(embed_w, lin_w, lin_b, *, weight_dtype=jnp.float32):
    """One-time init: pad vocab to a multiple of the vocab tile and
    pre-transpose the linear weight to (D, V_pad) (lane-dense in vocab).
    Hoisted out of the per-call forward path."""
    vocab, _dim = lin_w.shape
    tile_v = _choose_tile_v(vocab)
    v_pad = _round_up(vocab, tile_v)
    pad = v_pad - vocab
    wT = jnp.pad(lin_w, ((0, pad), (0, 0))).T.astype(weight_dtype)   # (D, V_pad)
    bias = jnp.pad(lin_b, (0, pad)).reshape(1, v_pad).astype(jnp.float32)
    return embed_w.astype(jnp.float32), wT, bias


def cbow_forward(ids, embed_w, lin_wT, lin_b, *, vocab_size):
    """Forward pass.  ids: (B, C) int; params from prepare_cbow_params."""
    batch, ctx = ids.shape
    _v, dim = embed_w.shape
    d2, v_pad = lin_wT.shape
    assert d2 == dim
    tile_v = min(MAX_TILE_V, v_pad)
    assert v_pad % tile_v == 0
    n_tiles = v_pad // tile_v

    kernel = functools.partial(_cbow_kernel, batch=batch, ctx=ctx)

    out = pl.pallas_call(
        kernel,
        out_shape=jax.ShapeDtypeStruct((batch, v_pad), jnp.float32),
        grid_spec=pltpu.PrefetchScalarGridSpec(
            num_scalar_prefetch=1,          # ids -> SMEM, fed to index_maps
            grid=(n_tiles,),
            in_specs=[
                # Embedding table: whole-array VMEM resident (toy vocab).
                pl.BlockSpec(memory_space=pltpu.MemorySpace.VMEM),
                # Pre-transposed weight: lane-dense vocab tiles, double-buffered.
                pl.BlockSpec((dim, tile_v), lambda j, ids_sref: (0, j)),
                # Bias tile.
                pl.BlockSpec((1, tile_v), lambda j, ids_sref: (0, j)),
            ],
            out_specs=pl.BlockSpec((batch, tile_v), lambda j, ids_sref: (0, j)),
            scratch_shapes=[pltpu.VMEM((batch, dim), jnp.float32)],
        ),
        compiler_params=pltpu.CompilerParams(
            dimension_semantics=("parallel",)),
    )(ids.reshape(-1).astype(jnp.int32), embed_w, lin_wT, lin_b)

    return out[:, :vocab_size]


def cbow_reference(ids, embed_w, lin_w, lin_b):
    """Pure-JAX reference (PyTorch CBOW_Model forward semantics)."""
    rows = embed_w[ids]                                           # (B, C, D)
    norms = jnp.sqrt(jnp.sum(rows * rows, axis=-1, keepdims=True))
    scale = jnp.where(norms > EMBED_MAX_NORM, EMBED_MAX_NORM / norms, 1.0)
    x = jnp.sum(rows * scale, axis=1)                             # (B, D)
    return x @ lin_w.T + lin_b


if __name__ == "__main__":
    key = jax.random.PRNGKey(0)
    k_ids, k_emb, k_w, k_b = jax.random.split(key, 4)

    # Deterministic synthetic parameters (shapes from CBOW_Model.__init__):
    #   embed.weight : (vocab_size, embedding_dim)
    #   linear.weight: (vocab_size, embedding_dim)
    #   linear.bias  : (vocab_size,)
    embed_w = jax.random.normal(k_emb, (VOCAB, DIM), dtype=jnp.float32)
    bound = 1.0 / (DIM ** 0.5)
    lin_w = jax.random.uniform(k_w, (VOCAB, DIM), minval=-bound, maxval=bound,
                               dtype=jnp.float32)
    lin_b = jax.random.uniform(k_b, (VOCAB,), minval=-bound, maxval=bound,
                               dtype=jnp.float32)
    ids = jax.random.randint(k_ids, (BATCH, CTX), 0, VOCAB, dtype=jnp.int32)

    ref = cbow_reference(ids, embed_w, lin_w, lin_b)

    # --- f32 weights: bit-faithful to the PyTorch module -----------------
    emb_p, wT_p, b_p = prepare_cbow_params(embed_w, lin_w, lin_b,
                                           weight_dtype=jnp.float32)
    out = jax.block_until_ready(
        cbow_forward(ids, emb_p, wT_p, b_p, vocab_size=VOCAB))
    assert out.shape == (BATCH, VOCAB)
    assert jnp.allclose(out, ref, atol=1e-4, rtol=1e-4), "f32 mismatch vs reference"

    # --- bf16 linear weight (halves the dominant HBM stream), f32 accum --
    emb_q, wT_q, b_q = prepare_cbow_params(embed_w, lin_w, lin_b,
                                           weight_dtype=jnp.bfloat16)
    out_bf16 = jax.block_until_ready(
        cbow_forward(ids, emb_q, wT_q, b_q, vocab_size=VOCAB))
    assert out_bf16.shape == (BATCH, VOCAB)
    assert jnp.allclose(out_bf16, ref, atol=5e-2, rtol=5e-2), "bf16 mismatch vs reference"

    print("KERNEL_OK")
</pallas_src>

<mosaic_0001>
module attributes {stable_mosaic.version = 11 : i64} {
  func.func @_cbow_kernel(%arg0: i32, %arg1: memref<48xi32, #tpu.memory_space<smem>>, %arg2: memref<200x32xf32, #tpu.memory_space<vmem>>, %arg3: memref<32x256xf32, #tpu.memory_space<vmem>>, %arg4: memref<1x256xf32, #tpu.memory_space<vmem>>, %arg5: memref<8x256xf32, #tpu.memory_space<vmem>>, %arg6: memref<8x32xf32, #tpu.memory_space<vmem>>) attributes {dimension_semantics = [#tpu.dimension_semantics<parallel>], iteration_bounds = array<i64: 1>, scalar_prefetch = 1 : i64, scratch_operands = 1 : i64, tpu.core_type = #tpu.core_type<tc>, window_params = [{pipeline_mode = #tpu.pipeline_mode<synchronous>, transform_indices = @transform_0, window_bounds = array<i64: 200, 32>}, {transform_indices = @transform_1, window_bounds = array<i64: 32, 256>}, {transform_indices = @transform_2, window_bounds = array<i64: 1, 256>}, {transform_indices = @transform_3, window_bounds = array<i64: 8, 256>}]} {
    %cst = arith.constant 0.000000e+00 : f32
    %0 = vector.broadcast %cst : f32 to vector<1x32xf32>
    %c0 = arith.constant 0 : index
    %1 = memref.load %arg1[%c0] : memref<48xi32, #tpu.memory_space<smem>>
    %2 = arith.index_cast %1 : i32 to index
    %c0_0 = arith.constant 0 : index
    %3 = vector.load %arg2[%2, %c0_0] : memref<200x32xf32, #tpu.memory_space<vmem>>, vector<1x32xf32>
    %4 = arith.mulf %3, %3 : vector<1x32xf32>
    %cst_1 = arith.constant dense<0.000000e+00> : vector<1xf32>
    %5 = vector.multi_reduction <add>, %4, %cst_1 [1] : vector<1x32xf32> to vector<1xf32>
    %6 = vector.shape_cast %5 : vector<1xf32> to vector<1x1xf32>
    %cst_2 = arith.constant 1.000000e+00 : f32
    %7 = vector.broadcast %cst_2 : f32 to vector<1x1xf32>
    %8 = arith.cmpf ogt, %6, %7 : vector<1x1xf32>
    %9 = math.rsqrt %6 : vector<1x1xf32>
    %cst_3 = arith.constant 1.000000e+00 : f32
    %10 = vector.broadcast %cst_3 : f32 to vector<1x1xf32>
    %11 = arith.mulf %10, %9 : vector<1x1xf32>
    %cst_4 = arith.constant 1.000000e+00 : f32
    %12 = vector.broadcast %cst_4 : f32 to vector<1x1xf32>
    %13 = arith.select %8, %11, %12 : vector<1x1xi1>, vector<1x1xf32>
    %14 = vector.broadcast %13 : vector<1x1xf32> to vector<1x32xf32>
    %15 = arith.mulf %3, %14 : vector<1x32xf32>
    %16 = arith.addf %0, %15 : vector<1x32xf32>
    %c1 = arith.constant 1 : index
    %17 = memref.load %arg1[%c1] : memref<48xi32, #tpu.memory_space<smem>>
    %18 = arith.index_cast %17 : i32 to index
    %c0_5 = arith.constant 0 : index
    %19 = vector.load %arg2[%18, %c0_5] : memref<200x32xf32, #tpu.memory_space<vmem>>, vector<1x32xf32>
    %20 = arith.mulf %19, %19 : vector<1x32xf32>
    %cst_6 = arith.constant dense<0.000000e+00> : vector<1xf32>
    %21 = vector.multi_reduction <add>, %20, %cst_6 [1] : vector<1x32xf32> to vector<1xf32>
    %22 = vector.shape_cast %21 : vector<1xf32> to vector<1x1xf32>
    %cst_7 = arith.constant 1.000000e+00 : f32
    %23 = vector.broadcast %cst_7 : f32 to vector<1x1xf32>
    %24 = arith.cmpf ogt, %22, %23 : vector<1x1xf32>
    %25 = math.rsqrt %22 : vector<1x1xf32>
    %cst_8 = arith.constant 1.000000e+00 : f32
    %26 = vector.broadcast %cst_8 : f32 to vector<1x1xf32>
    %27 = arith.mulf %26, %25 : vector<1x1xf32>
    %cst_9 = arith.constant 1.000000e+00 : f32
    %28 = vector.broadcast %cst_9 : f32 to vector<1x1xf32>
    %29 = arith.select %24, %27, %28 : vector<1x1xi1>, vector<1x1xf32>
    %30 = vector.broadcast %29 : vector<1x1xf32> to vector<1x32xf32>
    %31 = arith.mulf %19, %30 : vector<1x32xf32>
    %32 = arith.addf %16, %31 : vector<1x32xf32>
    %c2 = arith.constant 2 : index
    %33 = memref.load %arg1[%c2] : memref<48xi32, #tpu.memory_space<smem>>
    %34 = arith.index_cast %33 : i32 to index
    %c0_10 = arith.constant 0 : index
    %35 = vector.load %arg2[%34, %c0_10] : memref<200x32xf32, #tpu.memory_space<vmem>>, vector<1x32xf32>
    %36 = arith.mulf %35, %35 : vector<1x32xf32>
    %cst_11 = arith.constant dense<0.000000e+00> : vector<1xf32>
    %37 = vector.multi_reduction <add>, %36, %cst_11 [1] : vector<1x32xf32> to vector<1xf32>
    %38 = vector.shape_cast %37 : vector<1xf32> to vector<1x1xf32>
    %cst_12 = arith.constant 1.000000e+00 : f32
    %39 = vector.broadcast %cst_12 : f32 to vector<1x1xf32>
    %40 = arith.cmpf ogt, %38, %39 : vector<1x1xf32>
    %41 = math.rsqrt %38 : vector<1x1xf32>
    %cst_13 = arith.constant 1.000000e+00 : f32
    %42 = vector.broadcast %cst_13 : f32 to vector<1x1xf32>
    %43 = arith.mulf %42, %41 : vector<1x1xf32>
    %cst_14 = arith.constant 1.000000e+00 : f32
    %44 = vector.broadcast %cst_14 : f32 to vector<1x1xf32>
    %45 = arith.select %40, %43, %44 : vector<1x1xi1>, vector<1x1xf32>
    %46 = vector.broadcast %45 : vector<1x1xf32> to vector<1x32xf32>
    %47 = arith.mulf %35, %46 : vector<1x32xf32>
    %48 = arith.addf %32, %47 : vector<1x32xf32>
    %c3 = arith.constant 3 : index
    %49 = memref.load %arg1[%c3] : memref<48xi32, #tpu.memory_space<smem>>
    %50 = arith.index_cast %49 : i32 to index
    %c0_15 = arith.constant 0 : index
    %51 = vector.load %arg2[%50, %c0_15] : memref<200x32xf32, #tpu.memory_space<vmem>>, vector<1x32xf32>
    %52 = arith.mulf %51, %51 : vector<1x32xf32>
    %cst_16 = arith.constant dense<0.000000e+00> : vector<1xf32>
    %53 = vector.multi_reduction <add>, %52, %cst_16 [1] : vector<1x32xf32> to vector<1xf32>
    %54 = vector.shape_cast %53 : vector<1xf32> to vector<1x1xf32>
    %cst_17 = arith.constant 1.000000e+00 : f32
    %55 = vector.broadcast %cst_17 : f32 to vector<1x1xf32>
    %56 = arith.cmpf ogt, %54, %55 : vector<1x1xf32>
    %57 = math.rsqrt %54 : vector<1x1xf32>
    %cst_18 = arith.constant 1.000000e+00 : f32
    %58 = vector.broadcast %cst_18 : f32 to vector<1x1xf32>
    %59 = arith.mulf %58, %57 : vector<1x1xf32>
    %cst_19 = arith.constant 1.000000e+00 : f32
    %60 = vector.broadcast %cst_19 : f32 to vector<1x1xf32>
    %61 = arith.select %56, %59, %60 : vector<1x1xi1>, vector<1x1xf32>
    %62 = vector.broadcast %61 : vector<1x1xf32> to vector<1x32xf32>
    %63 = arith.mulf %51, %62 : vector<1x32xf32>
    %64 = arith.addf %48, %63 : vector<1x32xf32>
    %c4 = arith.constant 4 : index
    %65 = memref.load %arg1[%c4] : memref<48xi32, #tpu.memory_space<smem>>
    %66 = arith.index_cast %65 : i32 to index
    %c0_20 = arith.constant 0 : index
    %67 = vector.load %arg2[%66, %c0_20] : memref<200x32xf32, #tpu.memory_space<vmem>>, vector<1x32xf32>
    %68 = arith.mulf %67, %67 : vector<1x32xf32>
    %cst_21 = arith.constant dense<0.000000e+00> : vector<1xf32>
    %69 = vector.multi_reduction <add>, %68, %cst_21 [1] : vector<1x32xf32> to vector<1xf32>
    %70 = vector.shape_cast %69 : vector<1xf32> to vector<1x1xf32>
    %cst_22 = arith.constant 1.000000e+00 : f32
    %71 = vector.broadcast %cst_22 : f32 to vector<1x1xf32>
    %72 = arith.cmpf ogt, %70, %71 : vector<1x1xf32>
    %73 = math.rsqrt %70 : vector<1x1xf32>
    %cst_23 = arith.constant 1.000000e+00 : f32
    %74 = vector.broadcast %cst_23 : f32 to vector<1x1xf32>
    %75 = arith.mulf %74, %73 : vector<1x1xf32>
    %cst_24 = arith.constant 1.000000e+00 : f32
    %76 = vector.broadcast %cst_24 : f32 to vector<1x1xf32>
    %77 = arith.select %72, %75, %76 : vector<1x1xi1>, vector<1x1xf32>
    %78 = vector.broadcast %77 : vector<1x1xf32> to vector<1x32xf32>
    %79 = arith.mulf %67, %78 : vector<1x32xf32>
    %80 = arith.addf %64, %79 : vector<1x32xf32>
    %c5 = arith.constant 5 : index
    %81 = memref.load %arg1[%c5] : memref<48xi32, #tpu.memory_space<smem>>
    %82 = arith.index_cast %81 : i32 to index
    %c0_25 = arith.constant 0 : index
    %83 = vector.load %arg2[%82, %c0_25] : memref<200x32xf32, #tpu.memory_space<vmem>>, vector<1x32xf32>
    %84 = arith.mulf %83, %83 : vector<1x32xf32>
    %cst_26 = arith.constant dense<0.000000e+00> : vector<1xf32>
    %85 = vector.multi_reduction <add>, %84, %cst_26 [1] : vector<1x32xf32> to vector<1xf32>
    %86 = vector.shape_cast %85 : vector<1xf32> to vector<1x1xf32>
    %cst_27 = arith.constant 1.000000e+00 : f32
    %87 = vector.broadcast %cst_27 : f32 to vector<1x1xf32>
    %88 = arith.cmpf ogt, %86, %87 : vector<1x1xf32>
    %89 = math.rsqrt %86 : vector<1x1xf32>
    %cst_28 = arith.constant 1.000000e+00 : f32
    %90 = vector.broadcast %cst_28 : f32 to vector<1x1xf32>
    %91 = arith.mulf %90, %89 : vector<1x1xf32>
    %cst_29 = arith.constant 1.000000e+00 : f32
    %92 = vector.broadcast %cst_29 : f32 to vector<1x1xf32>
    %93 = arith.select %88, %91, %92 : vector<1x1xi1>, vector<1x1xf32>
    %94 = vector.broadcast %93 : vector<1x1xf32> to vector<1x32xf32>
    %95 = arith.mulf %83, %94 : vector<1x32xf32>
    %96 = arith.addf %80, %95 : vector<1x32xf32>
    %c0_30 = arith.constant 0 : index
    %c0_31 = arith.constant 0 : index
    %97 = vector.load %arg6[%c0_30, %c0_31] : memref<8x32xf32, #tpu.memory_space<vmem>>, vector<1x32xf32>
    tpu.vector_store %arg6[%c0_30, %c0_31], %96 {strides = array<i32>} : memref<8x32xf32, #tpu.memory_space<vmem>>, vector<1x32xf32>,
    %cst_32 = arith.constant 0.000000e+00 : f32
    %98 = vector.broadcast %cst_32 : f32 to vector<1x32xf32>
    %c6 = arith.constant 6 : index
    %99 = memref.load %arg1[%c6] : memref<48xi32, #tpu.memory_space<smem>>
    %100 = arith.index_cast %99 : i32 to index
    %c0_33 = arith.constant 0 : index
    %101 = vector.load %arg2[%100, %c0_33] : memref<200x32xf32, #tpu.memory_space<vmem>>, vector<1x32xf32>
    %102 = arith.mulf %101, %101 : vector<1x32xf32>
    %cst_34 = arith.constant dense<0.000000e+00> : vector<1xf32>
    %103 = vector.multi_reduction <add>, %102, %cst_34 [1] : vector<1x32xf32> to vector<1xf32>
    %104 = vector.shape_cast %103 : vector<1xf32> to vector<1x1xf32>
    %cst_35 = arith.constant 1.000000e+00 : f32
    %105 = vector.broadcast %cst_35 : f32 to vector<1x1xf32>
    %106 = arith.cmpf ogt, %104, %105 : vector<1x1xf32>
    %107 = math.rsqrt %104 : vector<1x1xf32>
    %cst_36 = arith.constant 1.000000e+00 : f32
    %108 = vector.broadcast %cst_36 : f32 to vector<1x1xf32>
    %109 = arith.mulf %108, %107 : vector<1x1xf32>
    %cst_37 = arith.constant 1.000000e+00 : f32
    %110 = vector.broadcast %cst_37 : f32 to vector<1x1xf32>
    %111 = arith.select %106, %109, %110 : vector<1x1xi1>, vector<1x1xf32>
    %112 = vector.broadcast %111 : vector<1x1xf32> to vector<1x32xf32>
    %113 = arith.mulf %101, %112 : vector<1x32xf32>
    %114 = arith.addf %98, %113 : vector<1x32xf32>
    %c7 = arith.constant 7 : index
    %115 = memref.load %arg1[%c7] : memref<48xi32, #tpu.memory_space<smem>>
    %116 = arith.index_cast %115 : i32 to index
    %c0_38 = arith.constant 0 : index
    %117 = vector.load %arg2[%116, %c0_38] : memref<200x32xf32, #tpu.memory_space<vmem>>, vector<1x32xf32>
    %118 = arith.mulf %117, %117 : vector<1x32xf32>
    %cst_39 = arith.constant dense<0.000000e+00> : vector<1xf32>
    %119 = vector.multi_reduction <add>, %118, %cst_39 [1] : vector<1x32xf32> to vector<1xf32>
    %120 = vector.shape_cast %119 : vector<1xf32> to vector<1x1xf32>
    %cst_40 = arith.constant 1.000000e+00 : f32
    %121 = vector.broadcast %cst_40 : f32 to vector<1x1xf32>
    %122 = arith.cmpf ogt, %120, %121 : vector<1x1xf32>
    %123 = math.rsqrt %120 : vector<1x1xf32>
    %cst_41 = arith.constant 1.000000e+00 : f32
    %124 = vector.broadcast %cst_41 : f32 to vector<1x1xf32>
    %125 = arith.mulf %124, %123 : vector<1x1xf32>
    %cst_42 = arith.constant 1.000000e+00 : f32
    %126 = vector.broadcast %cst_42 : f32 to vector<1x1xf32>
    %127 = arith.select %122, %125, %126 : vector<1x1xi1>, vector<1x1xf32>
    %128 = vector.broadcast %127 : vector<1x1xf32> to vector<1x32xf32>
    %129 = arith.mulf %117, %128 : vector<1x32xf32>
    %130 = arith.addf %114, %129 : vector<1x32xf32>
    %c8 = arith.constant 8 : index
    %131 = memref.load %arg1[%c8] : memref<48xi32, #tpu.memory_space<smem>>
    %132 = arith.index_cast %131 : i32 to index
    %c0_43 = arith.constant 0 : index
    %133 = vector.load %arg2[%132, %c0_43] : memref<200x32xf32, #tpu.memory_space<vmem>>, vector<1x32xf32>
    %134 = arith.mulf %133, %133 : vector<1x32xf32>
    %cst_44 = arith.constant dense<0.000000e+00> : vector<1xf32>
    %135 = vector.multi_reduction <add>, %134, %cst_44 [1] : vector<1x32xf32> to vector<1xf32>
    %136 = vector.shape_cast %135 : vector<1xf32> to vector<1x1xf32>
    %cst_45 = arith.constant 1.000000e+00 : f32
    %137 = vector.broadcast %cst_45 : f32 to vector<1x1xf32>
    %138 = arith.cmpf ogt, %136, %137 : vector<1x1xf32>
    %139 = math.rsqrt %136 : vector<1x1xf32>
    %cst_46 = arith.constant 1.000000e+00 : f32
    %140 = vector.broadcast %cst_46 : f32 to vector<1x1xf32>
    %141 = arith.mulf %140, %139 : vector<1x1xf32>
    %cst_47 = arith.constant 1.000000e+00 : f32
    %142 = vector.broadcast %cst_47 : f32 to vector<1x1xf32>
    %143 = arith.select %138, %141, %142 : vector<1x1xi1>, vector<1x1xf32>
    %144 = vector.broadcast %143 : vector<1x1xf32> to vector<1x32xf32>
    %145 = arith.mulf %133, %144 : vector<1x32xf32>
    %146 = arith.addf %130, %145 : vector<1x32xf32>
    %c9 = arith.constant 9 : index
    %147 = memref.load %arg1[%c9] : memref<48xi32, #tpu.memory_space<smem>>
    %148 = arith.index_cast %147 : i32 to index
    %c0_48 = arith.constant 0 : index
    %149 = vector.load %arg2[%148, %c0_48] : memref<200x32xf32, #tpu.memory_space<vmem>>, vector<1x32xf32>
    %150 = arith.mulf %149, %149 : vector<1x32xf32>
    %cst_49 = arith.constant dense<0.000000e+00> : vector<1xf32>
    %151 = vector.multi_reduction <add>, %150, %cst_49 [1] : vector<1x32xf32> to vector<1xf32>
    %152 = vector.shape_cast %151 : vector<1xf32> to vector<1x1xf32>
    %cst_50 = arith.constant 1.000000e+00 : f32
    %153 = vector.broadcast %cst_50 : f32 to vector<1x1xf32>
    %154 = arith.cmpf ogt, %152, %153 : vector<1x1xf32>
    %155 = math.rsqrt %152 : vector<1x1xf32>
    %cst_51 = arith.constant 1.000000e+00 : f32
    %156 = vector.broadcast %cst_51 : f32 to vector<1x1xf32>
    %157 = arith.mulf %156, %155 : vector<1x1xf32>
    %cst_52 = arith.constant 1.000000e+00 : f32
    %158 = vector.broadcast %cst_52 : f32 to vector<1x1xf32>
    %159 = arith.select %154, %157, %158 : vector<1x1xi1>, vector<1x1xf32>
    %160 = vector.broadcast %159 : vector<1x1xf32> to vector<1x32xf32>
    %161 = arith.mulf %149, %160 : vector<1x32xf32>
    %162 = arith.addf %146, %161 : vector<1x32xf32>
    %c10 = arith.constant 10 : index
    %163 = memref.load %arg1[%c10] : memref<48xi32, #tpu.memory_space<smem>>
    %164 = arith.index_cast %163 : i32 to index
    %c0_53 = arith.constant 0 : index
    %165 = vector.load %arg2[%164, %c0_53] : memref<200x32xf32, #tpu.memory_space<vmem>>, vector<1x32xf32>
    %166 = arith.mulf %165, %165 : vector<1x32xf32>
    %cst_54 = arith.constant dense<0.000000e+00> : vector<1xf32>
    %167 = vector.multi_reduction <add>, %166, %cst_54 [1] : vector<1x32xf32> to vector<1xf32>
    %168 = vector.shape_cast %167 : vector<1xf32> to vector<1x1xf32>
    %cst_55 = arith.constant 1.000000e+00 : f32
    %169 = vector.broadcast %cst_55 : f32 to vector<1x1xf32>
    %170 = arith.cmpf ogt, %168, %169 : vector<1x1xf32>
    %171 = math.rsqrt %168 : vector<1x1xf32>
    %cst_56 = arith.constant 1.000000e+00 : f32
    %172 = vector.broadcast %cst_56 : f32 to vector<1x1xf32>
    %173 = arith.mulf %172, %171 : vector<1x1xf32>
    %cst_57 = arith.constant 1.000000e+00 : f32
    %174 = vector.broadcast %cst_57 : f32 to vector<1x1xf32>
    %175 = arith.select %170, %173, %174 : vector<1x1xi1>, vector<1x1xf32>
    %176 = vector.broadcast %175 : vector<1x1xf32> to vector<1x32xf32>
    %177 = arith.mulf %165, %176 : vector<1x32xf32>
    %178 = arith.addf %162, %177 : vector<1x32xf32>
    %c11 = arith.constant 11 : index
    %179 = memref.load %arg1[%c11] : memref<48xi32, #tpu.memory_space<smem>>
    %180 = arith.index_cast %179 : i32 to index
    %c0_58 = arith.constant 0 : index
    %181 = vector.load %arg2[%180, %c0_58] : memref<200x32xf32, #tpu.memory_space<vmem>>, vector<1x32xf32>
    %182 = arith.mulf %181, %181 : vector<1x32xf32>
    %cst_59 = arith.constant dense<0.000000e+00> : vector<1xf32>
    %183 = vector.multi_reduction <add>, %182, %cst_59 [1] : vector<1x32xf32> to vector<1xf32>
    %184 = vector.shape_cast %183 : vector<1xf32> to vector<1x1xf32>
    %cst_60 = arith.constant 1.000000e+00 : f32
    %185 = vector.broadcast %cst_60 : f32 to vector<1x1xf32>
    %186 = arith.cmpf ogt, %184, %185 : vector<1x1xf32>
    %187 = math.rsqrt %184 : vector<1x1xf32>
    %cst_61 = arith.constant 1.000000e+00 : f32
    %188 = vector.broadcast %cst_61 : f32 to vector<1x1xf32>
    %189 = arith.mulf %188, %187 : vector<1x1xf32>
    %cst_62 = arith.constant 1.000000e+00 : f32
    %190 = vector.broadcast %cst_62 : f32 to vector<1x1xf32>
    %191 = arith.select %186, %189, %190 : vector<1x1xi1>, vector<1x1xf32>
    %192 = vector.broadcast %191 : vector<1x1xf32> to vector<1x32xf32>
    %193 = arith.mulf %181, %192 : vector<1x32xf32>
    %194 = arith.addf %178, %193 : vector<1x32xf32>
    %c1_63 = arith.constant 1 : index
    %c0_64 = arith.constant 0 : index
    %195 = vector.load %arg6[%c1_63, %c0_64] : memref<8x32xf32, #tpu.memory_space<vmem>>, vector<1x32xf32>
    tpu.vector_store %arg6[%c1_63, %c0_64], %194 {strides = array<i32>} : memref<8x32xf32, #tpu.memory_space<vmem>>, vector<1x32xf32>,
    %cst_65 = arith.constant 0.000000e+00 : f32
    %196 = vector.broadcast %cst_65 : f32 to vector<1x32xf32>
    %c12 = arith.constant 12 : index
    %197 = memref.load %arg1[%c12] : memref<48xi32, #tpu.memory_space<smem>>
    %198 = arith.index_cast %197 : i32 to index
    %c0_66 = arith.constant 0 : index
    %199 = vector.load %arg2[%198, %c0_66] : memref<200x32xf32, #tpu.memory_space<vmem>>, vector<1x32xf32>
    %200 = arith.mulf %199, %199 : vector<1x32xf32>
    %cst_67 = arith.constant dense<0.000000e+00> : vector<1xf32>
    %201 = vector.multi_reduction <add>, %200, %cst_67 [1] : vector<1x32xf32> to vector<1xf32>
    %202 = vector.shape_cast %201 : vector<1xf32> to vector<1x1xf32>
    %cst_68 = arith.constant 1.000000e+00 : f32
    %203 = vector.broadcast %cst_68 : f32 to vector<1x1xf32>
    %204 = arith.cmpf ogt, %202, %203 : vector<1x1xf32>
    %205 = math.rsqrt %202 : vector<1x1xf32>
    %cst_69 = arith.constant 1.000000e+00 : f32
    %206 = vector.broadcast %cst_69 : f32 to vector<1x1xf32>
    %207 = arith.mulf %206, %205 : vector<1x1xf32>
    %cst_70 = arith.constant 1.000000e+00 : f32
    %208 = vector.broadcast %cst_70 : f32 to vector<1x1xf32>
    %209 = arith.select %204, %207, %208 : vector<1x1xi1>, vector<1x1xf32>
    %210 = vector.broadcast %209 : vector<1x1xf32> to vector<1x32xf32>
    %211 = arith.mulf %199, %210 : vector<1x32xf32>
    %212 = arith.addf %196, %211 : vector<1x32xf32>
    %c13 = arith.constant 13 : index
    %213 = memref.load %arg1[%c13] : memref<48xi32, #tpu.memory_space<smem>>
    %214 = arith.index_cast %213 : i32 to index
    %c0_71 = arith.constant 0 : index
    %215 = vector.load %arg2[%214, %c0_71] : memref<200x32xf32, #tpu.memory_space<vmem>>, vector<1x32xf32>
    %216 = arith.mulf %215, %215 : vector<1x32xf32>
    %cst_72 = arith.constant dense<0.000000e+00> : vector<1xf32>
    %217 = vector.multi_reduction <add>, %216, %cst_72 [1] : vector<1x32xf32> to vector<1xf32>
    %218 = vector.shape_cast %217 : vector<1xf32> to vector<1x1xf32>
    %cst_73 = arith.constant 1.000000e+00 : f32
    %219 = vector.broadcast %cst_73 : f32 to vector<1x1xf32>
    %220 = arith.cmpf ogt, %218, %219 : vector<1x1xf32>
    %221 = math.rsqrt %218 : vector<1x1xf32>
    %cst_74 = arith.constant 1.000000e+00 : f32
    %222 = vector.broadcast %cst_74 : f32 to vector<1x1xf32>
    %223 = arith.mulf %222, %221 : vector<1x1xf32>
    %cst_75 = arith.constant 1.000000e+00 : f32
    %224 = vector.broadcast %cst_75 : f32 to vector<1x1xf32>
    %225 = arith.select %220, %223, %224 : vector<1x1xi1>, vector<1x1xf32>
    %226 = vector.broadcast %225 : vector<1x1xf32> to vector<1x32xf32>
    %227 = arith.mulf %215, %226 : vector<1x32xf32>
    %228 = arith.addf %212, %227 : vector<1x32xf32>
    %c14 = arith.constant 14 : index
    %229 = memref.load %arg1[%c14] : memref<48xi32, #tpu.memory_space<smem>>
    %230 = arith.index_cast %229 : i32 to index
    %c0_76 = arith.constant 0 : index
    %231 = vector.load %arg2[%230, %c0_76] : memref<200x32xf32, #tpu.memory_space<vmem>>, vector<1x32xf32>
    %232 = arith.mulf %231, %231 : vector<1x32xf32>
    %cst_77 = arith.constant dense<0.000000e+00> : vector<1xf32>
    %233 = vector.multi_reduction <add>, %232, %cst_77 [1] : vector<1x32xf32> to vector<1xf32>
    %234 = vector.shape_cast %233 : vector<1xf32> to vector<1x1xf32>
    %cst_78 = arith.constant 1.000000e+00 : f32
    %235 = vector.broadcast %cst_78 : f32 to vector<1x1xf32>
    %236 = arith.cmpf ogt, %234, %235 : vector<1x1xf32>
    %237 = math.rsqrt %234 : vector<1x1xf32>
    %cst_79 = arith.constant 1.000000e+00 : f32
    %238 = vector.broadcast %cst_79 : f32 to vector<1x1xf32>
    %239 = arith.mulf %238, %237 : vector<1x1xf32>
    %cst_80 = arith.constant 1.000000e+00 : f32
    %240 = vector.broadcast %cst_80 : f32 to vector<1x1xf32>
    %241 = arith.select %236, %239, %240 : vector<1x1xi1>, vector<1x1xf32>
    %242 = vector.broadcast %241 : vector<1x1xf32> to vector<1x32xf32>
    %243 = arith.mulf %231, %242 : vector<1x32xf32>
    %244 = arith.addf %228, %243 : vector<1x32xf32>
    %c15 = arith.constant 15 : index
    %245 = memref.load %arg1[%c15] : memref<48xi32, #tpu.memory_space<smem>>
    %246 = arith.index_cast %245 : i32 to index
    %c0_81 = arith.constant 0 : index
    %247 = vector.load %arg2[%246, %c0_81] : memref<200x32xf32, #tpu.memory_space<vmem>>, vector<1x32xf32>
    %248 = arith.mulf %247, %247 : vector<1x32xf32>
    %cst_82 = arith.constant dense<0.000000e+00> : vector<1xf32>
    %249 = vector.multi_reduction <add>, %248, %cst_82 [1] : vector<1x32xf32> to vector<1xf32>
    %250 = vector.shape_cast %249 : vector<1xf32> to vector<1x1xf32>
    %cst_83 = arith.constant 1.000000e+00 : f32
    %251 = vector.broadcast %cst_83 : f32 to vector<1x1xf32>
    %252 = arith.cmpf ogt, %250, %251 : vector<1x1xf32>
    %253 = math.rsqrt %250 : vector<1x1xf32>
    %cst_84 = arith.constant 1.000000e+00 : f32
    %254 = vector.broadcast %cst_84 : f32 to vector<1x1xf32>
    %255 = arith.mulf %254, %253 : vector<1x1xf32>
    %cst_85 = arith.constant 1.000000e+00 : f32
    %256 = vector.broadcast %cst_85 : f32 to vector<1x1xf32>
    %257 = arith.select %252, %255, %256 : vector<1x1xi1>, vector<1x1xf32>
    %258 = vector.broadcast %257 : vector<1x1xf32> to vector<1x32xf32>
    %259 = arith.mulf %247, %258 : vector<1x32xf32>
    %260 = arith.addf %244, %259 : vector<1x32xf32>
    %c16 = arith.constant 16 : index
    %261 = memref.load %arg1[%c16] : memref<48xi32, #tpu.memory_space<smem>>
    %262 = arith.index_cast %261 : i32 to index
    %c0_86 = arith.constant 0 : index
    %263 = vector.load %arg2[%262, %c0_86] : memref<200x32xf32, #tpu.memory_space<vmem>>, vector<1x32xf32>
    %264 = arith.mulf %263, %263 : vector<1x32xf32>
    %cst_87 = arith.constant dense<0.000000e+00> : vector<1xf32>
    %265 = vector.multi_reduction <add>, %264, %cst_87 [1] : vector<1x32xf32> to vector<1xf32>
    %266 = vector.shape_cast %265 : vector<1xf32> to vector<1x1xf32>
    %cst_88 = arith.constant 1.000000e+00 : f32
    %267 = vector.broadcast %cst_88 : f32 to vector<1x1xf32>
    %268 = arith.cmpf ogt, %266, %267 : vector<1x1xf32>
    %269 = math.rsqrt %266 : vector<1x1xf32>
    %cst_89 = arith.constant 1.000000e+00 : f32
    %270 = vector.broadcast %cst_89 : f32 to vector<1x1xf32>
    %271 = arith.mulf %270, %269 : vector<1x1xf32>
    %cst_90 = arith.constant 1.000000e+00 : f32
    %272 = vector.broadcast %cst_90 : f32 to vector<1x1xf32>
    %273 = arith.select %268, %271, %272 : vector<1x1xi1>, vector<1x1xf32>
    %274 = vector.broadcast %273 : vector<1x1xf32> to vector<1x32xf32>
    %275 = arith.mulf %263, %274 : vector<1x32xf32>
    %276 = arith.addf %260, %275 : vector<1x32xf32>
    %c17 = arith.constant 17 : index
    %277 = memref.load %arg1[%c17] : memref<48xi32, #tpu.memory_space<smem>>
    %278 = arith.index_cast %277 : i32 to index
    %c0_91 = arith.constant 0 : index
    %279 = vector.load %arg2[%278, %c0_91] : memref<200x32xf32, #tpu.memory_space<vmem>>, vector<1x32xf32>
    %280 = arith.mulf %279, %279 : vector<1x32xf32>
    %cst_92 = arith.constant dense<0.000000e+00> : vector<1xf32>
    %281 = vector.multi_reduction <add>, %280, %cst_92 [1] : vector<1x32xf32> to vector<1xf32>
    %282 = vector.shape_cast %281 : vector<1xf32> to vector<1x1xf32>
    %cst_93 = arith.constant 1.000000e+00 : f32
    %283 = vector.broadcast %cst_93 : f32 to vector<1x1xf32>
    %284 = arith.cmpf ogt, %282, %283 : vector<1x1xf32>
    %285 = math.rsqrt %282 : vector<1x1xf32>
    %cst_94 = arith.constant 1.000000e+00 : f32
    %286 = vector.broadcast %cst_94 : f32 to vector<1x1xf32>
    %287 = arith.mulf %286, %285 : vector<1x1xf32>
    %cst_95 = arith.constant 1.000000e+00 : f32
    %288 = vector.broadcast %cst_95 : f32 to vector<1x1xf32>
    %289 = arith.select %284, %287, %288 : vector<1x1xi1>, vector<1x1xf32>
    %290 = vector.broadcast %289 : vector<1x1xf32> to vector<1x32xf32>
    %291 = arith.mulf %279, %290 : vector<1x32xf32>
    %292 = arith.addf %276, %291 : vector<1x32xf32>
    %c2_96 = arith.constant 2 : index
    %c0_97 = arith.constant 0 : index
    %293 = vector.load %arg6[%c2_96, %c0_97] : memref<8x32xf32, #tpu.memory_space<vmem>>, vector<1x32xf32>
    tpu.vector_store %arg6[%c2_96, %c0_97], %292 {strides = array<i32>} : memref<8x32xf32, #tpu.memory_space<vmem>>, vector<1x32xf32>,
    %cst_98 = arith.constant 0.000000e+00 : f32
    %294 = vector.broadcast %cst_98 : f32 to vector<1x32xf32>
    %c18 = arith.constant 18 : index
    %295 = memref.load %arg1[%c18] : memref<48xi32, #tpu.memory_space<smem>>
    %296 = arith.index_cast %295 : i32 to index
    %c0_99 = arith.constant 0 : index
    %297 = vector.load %arg2[%296, %c0_99] : memref<200x32xf32, #tpu.memory_space<vmem>>, vector<1x32xf32>
    %298 = arith.mulf %297, %297 : vector<1x32xf32>
    %cst_100 = arith.constant dense<0.000000e+00> : vector<1xf32>
    %299 = vector.multi_reduction <add>, %298, %cst_100 [1] : vector<1x32xf32> to vector<1xf32>
    %300 = vector.shape_cast %299 : vector<1xf32> to vector<1x1xf32>
    %cst_101 = arith.constant 1.000000e+00 : f32
    %301 = vector.broadcast %cst_101 : f32 to vector<1x1xf32>
    %302 = arith.cmpf ogt, %300, %301 : vector<1x1xf32>
    %303 = math.rsqrt %300 : vector<1x1xf32>
    %cst_102 = arith.constant 1.000000e+00 : f32
    %304 = vector.broadcast %cst_102 : f32 to vector<1x1xf32>
    %305 = arith.mulf %304, %303 : vector<1x1xf32>
    %cst_103 = arith.constant 1.000000e+00 : f32
    %306 = vector.broadcast %cst_103 : f32 to vector<1x1xf32>
    %307 = arith.select %302, %305, %306 : vector<1x1xi1>, vector<1x1xf32>
    %308 = vector.broadcast %307 : vector<1x1xf32> to vector<1x32xf32>
    %309 = arith.mulf %297, %308 : vector<1x32xf32>
    %310 = arith.addf %294, %309 : vector<1x32xf32>
    %c19 = arith.constant 19 : index
    %311 = memref.load %arg1[%c19] : memref<48xi32, #tpu.memory_space<smem>>
    %312 = arith.index_cast %311 : i32 to index
    %c0_104 = arith.constant 0 : index
    %313 = vector.load %arg2[%312, %c0_104] : memref<200x32xf32, #tpu.memory_space<vmem>>, vector<1x32xf32>
    %314 = arith.mulf %313, %313 : vector<1x32xf32>
    %cst_105 = arith.constant dense<0.000000e+00> : vector<1xf32>
    %315 = vector.multi_reduction <add>, %314, %cst_105 [1] : vector<1x32xf32> to vector<1xf32>
    %316 = vector.shape_cast %315 : vector<1xf32> to vector<1x1xf32>
    %cst_106 = arith.constant 1.000000e+00 : f32
    %317 = vector.broadcast %cst_106 : f32 to vector<1x1xf32>
    %318 = arith.cmpf ogt, %316, %317 : vector<1x1xf32>
    %319 = math.rsqrt %316 : vector<1x1xf32>
    %cst_107 = arith.constant 1.000000e+00 : f32
    %320 = vector.broadcast %cst_107 : f32 to vector<1x1xf32>
    %321 = arith.mulf %320, %319 : vector<1x1xf32>
    %cst_108 = arith.constant 1.000000e+00 : f32
    %322 = vector.broadcast %cst_108 : f32 to vector<1x1xf32>
    %323 = arith.select %318, %321, %322 : vector<1x1xi1>, vector<1x1xf32>
    %324 = vector.broadcast %323 : vector<1x1xf32> to vector<1x32xf32>
    %325 = arith.mulf %313, %324 : vector<1x32xf32>
    %326 = arith.addf %310, %325 : vector<1x32xf32>
    %c20 = arith.constant 20 : index
    %327 = memref.load %arg1[%c20] : memref<48xi32, #tpu.memory_space<smem>>
    %328 = arith.index_cast %327 : i32 to index
    %c0_109 = arith.constant 0 : index
    %329 = vector.load %arg2[%328, %c0_109] : memref<200x32xf32, #tpu.memory_space<vmem>>, vector<1x32xf32>
    %330 = arith.mulf %329, %329 : vector<1x32xf32>
    %cst_110 = arith.constant dense<0.000000e+00> : vector<1xf32>
    %331 = vector.multi_reduction <add>, %330, %cst_110 [1] : vector<1x32xf32> to vector<1xf32>
    %332 = vector.shape_cast %331 : vector<1xf32> to vector<1x1xf32>
    %cst_111 = arith.constant 1.000000e+00 : f32
    %333 = vector.broadcast %cst_111 : f32 to vector<1x1xf32>
    %334 = arith.cmpf ogt, %332, %333 : vector<1x1xf32>
    %335 = math.rsqrt %332 : vector<1x1xf32>
    %cst_112 = arith.constant 1.000000e+00 : f32
    %336 = vector.broadcast %cst_112 : f32 to vector<1x1xf32>
    %337 = arith.mulf %336, %335 : vector<1x1xf32>
    %cst_113 = arith.constant 1.000000e+00 : f32
    %338 = vector.broadcast %cst_113 : f32 to vector<1x1xf32>
    %339 = arith.select %334, %337, %338 : vector<1x1xi1>, vector<1x1xf32>
    %340 = vector.broadcast %339 : vector<1x1xf32> to vector<1x32xf32>
    %341 = arith.mulf %329, %340 : vector<1x32xf32>
    %342 = arith.addf %326, %341 : vector<1x32xf32>
    %c21 = arith.constant 21 : index
    %343 = memref.load %arg1[%c21] : memref<48xi32, #tpu.memory_space<smem>>
    %344 = arith.index_cast %343 : i32 to index
    %c0_114 = arith.constant 0 : index
    %345 = vector.load %arg2[%344, %c0_114] : memref<200x32xf32, #tpu.memory_space<vmem>>, vector<1x32xf32>
    %346 = arith.mulf %345, %345 : vector<1x32xf32>
    %cst_115 = arith.constant dense<0.000000e+00> : vector<1xf32>
    %347 = vector.multi_reduction <add>, %346, %cst_115 [1] : vector<1x32xf32> to vector<1xf32>
    %348 = vector.shape_cast %347 : vector<1xf32> to vector<1x1xf32>
    %cst_116 = arith.constant 1.000000e+00 : f32
    %349 = vector.broadcast %cst_116 : f32 to vector<1x1xf32>
    %350 = arith.cmpf ogt, %348, %349 : vector<1x1xf32>
    %351 = math.rsqrt %348 : vector<1x1xf32>
    %cst_117 = arith.constant 1.000000e+00 : f32
    %352 = vector.broadcast %cst_117 : f32 to vector<1x1xf32>
    %353 = arith.mulf %352, %351 : vector<1x1xf32>
    %cst_118 = arith.constant 1.000000e+00 : f32
    %354 = vector.broadcast %cst_118 : f32 to vector<1x1xf32>
    %355 = arith.select %350, %353, %354 : vector<1x1xi1>, vector<1x1xf32>
    %356 = vector.broadcast %355 : vector<1x1xf32> to vector<1x32xf32>
    %357 = arith.mulf %345, %356 : vector<1x32xf32>
    %358 = arith.addf %342, %357 : vector<1x32xf32>
    %c22 = arith.constant 22 : index
    %359 = memref.load %arg1[%c22] : memref<48xi32, #tpu.memory_space<smem>>
    %360 = arith.index_cast %359 : i32 to index
    %c0_119 = arith.constant 0 : index
    %361 = vector.load %arg2[%360, %c0_119] : memref<200x32xf32, #tpu.memory_space<vmem>>, vector<1x32xf32>
    %362 = arith.mulf %361, %361 : vector<1x32xf32>
    %cst_120 = arith.constant dense<0.000000e+00> : vector<1xf32>
    %363 = vector.multi_reduction <add>, %362, %cst_120 [1] : vector<1x32xf32> to vector<1xf32>
    %364 = vector.shape_cast %363 : vector<1xf32> to vector<1x1xf32>
    %cst_121 = arith.constant 1.000000e+00 : f32
    %365 = vector.broadcast %cst_121 : f32 to vector<1x1xf32>
    %366 = arith.cmpf ogt, %364, %365 : vector<1x1xf32>
    %367 = math.rsqrt %364 : vector<1x1xf32>
    %cst_122 = arith.constant 1.000000e+00 : f32
    %368 = vector.broadcast %cst_122 : f32 to vector<1x1xf32>
    %369 = arith.mulf %368, %367 : vector<1x1xf32>
    %cst_123 = arith.constant 1.000000e+00 : f32
    %370 = vector.broadcast %cst_123 : f32 to vector<1x1xf32>
    %371 = arith.select %366, %369, %370 : vector<1x1xi1>, vector<1x1xf32>
    %372 = vector.broadcast %371 : vector<1x1xf32> to vector<1x32xf32>
    %373 = arith.mulf %361, %372 : vector<1x32xf32>
    %374 = arith.addf %358, %373 : vector<1x32xf32>
    %c23 = arith.constant 23 : index
    %375 = memref.load %arg1[%c23] : memref<48xi32, #tpu.memory_space<smem>>
    %376 = arith.index_cast %375 : i32 to index
    %c0_124 = arith.constant 0 : index
    %377 = vector.load %arg2[%376, %c0_124] : memref<200x32xf32, #tpu.memory_space<vmem>>, vector<1x32xf32>
    %378 = arith.mulf %377, %377 : vector<1x32xf32>
    %cst_125 = arith.constant dense<0.000000e+00> : vector<1xf32>
    %379 = vector.multi_reduction <add>, %378, %cst_125 [1] : vector<1x32xf32> to vector<1xf32>
    %380 = vector.shape_cast %379 : vector<1xf32> to vector<1x1xf32>
    %cst_126 = arith.constant 1.000000e+00 : f32
    %381 = vector.broadcast %cst_126 : f32 to vector<1x1xf32>
    %382 = arith.cmpf ogt, %380, %381 : vector<1x1xf32>
    %383 = math.rsqrt %380 : vector<1x1xf32>
    %cst_127 = arith.constant 1.000000e+00 : f32
    %384 = vector.broadcast %cst_127 : f32 to vector<1x1xf32>
    %385 = arith.mulf %384, %383 : vector<1x1xf32>
    %cst_128 = arith.constant 1.000000e+00 : f32
    %386 = vector.broadcast %cst_128 : f32 to vector<1x1xf32>
    %387 = arith.select %382, %385, %386 : vector<1x1xi1>, vector<1x1xf32>
    %388 = vector.broadcast %387 : vector<1x1xf32> to vector<1x32xf32>
    %389 = arith.mulf %377, %388 : vector<1x32xf32>
    %390 = arith.addf %374, %389 : vector<1x32xf32>
    %c3_129 = arith.constant 3 : index
    %c0_130 = arith.constant 0 : index
    %391 = vector.load %arg6[%c3_129, %c0_130] : memref<8x32xf32, #tpu.memory_space<vmem>>, vector<1x32xf32>
    tpu.vector_store %arg6[%c3_129, %c0_130], %390 {strides = array<i32>} : memref<8x32xf32, #tpu.memory_space<vmem>>, vector<1x32xf32>,
    %cst_131 = arith.constant 0.000000e+00 : f32
    %392 = vector.broadcast %cst_131 : f32 to vector<1x32xf32>
    %c24 = arith.constant 24 : index
    %393 = memref.load %arg1[%c24] : memref<48xi32, #tpu.memory_space<smem>>
    %394 = arith.index_cast %393 : i32 to index
    %c0_132 = arith.constant 0 : index
    %395 = vector.load %arg2[%394, %c0_132] : memref<200x32xf32, #tpu.memory_space<vmem>>, vector<1x32xf32>
    %396 = arith.mulf %395, %395 : vector<1x32xf32>
    %cst_133 = arith.constant dense<0.000000e+00> : vector<1xf32>
    %397 = vector.multi_reduction <add>, %396, %cst_133 [1] : vector<1x32xf32> to vector<1xf32>
    %398 = vector.shape_cast %397 : vector<1xf32> to vector<1x1xf32>
    %cst_134 = arith.constant 1.000000e+00 : f32
    %399 = vector.broadcast %cst_134 : f32 to vector<1x1xf32>
    %400 = arith.cmpf ogt, %398, %399 : vector<1x1xf32>
    %401 = math.rsqrt %398 : vector<1x1xf32>
    %cst_135 = arith.constant 1.000000e+00 : f32
    %402 = vector.broadcast %cst_135 : f32 to vector<1x1xf32>
    %403 = arith.mulf %402, %401 : vector<1x1xf32>
    %cst_136 = arith.constant 1.000000e+00 : f32
    %404 = vector.broadcast %cst_136 : f32 to vector<1x1xf32>
    %405 = arith.select %400, %403, %404 : vector<1x1xi1>, vector<1x1xf32>
    %406 = vector.broadcast %405 : vector<1x1xf32> to vector<1x32xf32>
    %407 = arith.mulf %395, %406 : vector<1x32xf32>
    %408 = arith.addf %392, %407 : vector<1x32xf32>
    %c25 = arith.constant 25 : index
    %409 = memref.load %arg1[%c25] : memref<48xi32, #tpu.memory_space<smem>>
    %410 = arith.index_cast %409 : i32 to index
    %c0_137 = arith.constant 0 : index
    %411 = vector.load %arg2[%410, %c0_137] : memref<200x32xf32, #tpu.memory_space<vmem>>, vector<1x32xf32>
    %412 = arith.mulf %411, %411 : vector<1x32xf32>
    %cst_138 = arith.constant dense<0.000000e+00> : vector<1xf32>
    %413 = vector.multi_reduction <add>, %412, %cst_138 [1] : vector<1x32xf32> to vector<1xf32>
    %414 = vector.shape_cast %413 : vector<1xf32> to vector<1x1xf32>
    %cst_139 = arith.constant 1.000000e+00 : f32
    %415 = vector.broadcast %cst_139 : f32 to vector<1x1xf32>
    %416 = arith.cmpf ogt, %414, %415 : vector<1x1xf32>
    %417 = math.rsqrt %414 : vector<1x1xf32>
    %cst_140 = arith.constant 1.000000e+00 : f32
    %418 = vector.broadcast %cst_140 : f32 to vector<1x1xf32>
    %419 = arith.mulf %418, %417 : vector<1x1xf32>
    %cst_141 = arith.constant 1.000000e+00 : f32
    %420 = vector.broadcast %cst_141 : f32 to vector<1x1xf32>
    %421 = arith.select %416, %419, %420 : vector<1x1xi1>, vector<1x1xf32>
    %422 = vector.broadcast %421 : vector<1x1xf32> to vector<1x32xf32>
    %423 = arith.mulf %411, %422 : vector<1x32xf32>
    %424 = arith.addf %408, %423 : vector<1x32xf32>
    %c26 = arith.constant 26 : index
    %425 = memref.load %arg1[%c26] : memref<48xi32, #tpu.memory_space<smem>>
    %426 = arith.index_cast %425 : i32 to index
    %c0_142 = arith.constant 0 : index
    %427 = vector.load %arg2[%426, %c0_142] : memref<200x32xf32, #tpu.memory_space<vmem>>, vector<1x32xf32>
    %428 = arith.mulf %427, %427 : vector<1x32xf32>
    %cst_143 = arith.constant dense<0.000000e+00> : vector<1xf32>
    %429 = vector.multi_reduction <add>, %428, %cst_143 [1] : vector<1x32xf32> to vector<1xf32>
    %430 = vector.shape_cast %429 : vector<1xf32> to vector<1x1xf32>
    %cst_144 = arith.constant 1.000000e+00 : f32
    %431 = vector.broadcast %cst_144 : f32 to vector<1x1xf32>
    %432 = arith.cmpf ogt, %430, %431 : vector<1x1xf32>
    %433 = math.rsqrt %430 : vector<1x1xf32>
    %cst_145 = arith.constant 1.000000e+00 : f32
    %434 = vector.broadcast %cst_145 : f32 to vector<1x1xf32>
    %435 = arith.mulf %434, %433 : vector<1x1xf32>
    %cst_146 = arith.constant 1.000000e+00 : f32
    %436 = vector.broadcast %cst_146 : f32 to vector<1x1xf32>
    %437 = arith.select %432, %435, %436 : vector<1x1xi1>, vector<1x1xf32>
    %438 = vector.broadcast %437 : vector<1x1xf32> to vector<1x32xf32>
    %439 = arith.mulf %427, %438 : vector<1x32xf32>
    %440 = arith.addf %424, %439 : vector<1x32xf32>
    %c27 = arith.constant 27 : index
    %441 = memref.load %arg1[%c27] : memref<48xi32, #tpu.memory_space<smem>>
    %442 = arith.index_cast %441 : i32 to index
    %c0_147 = arith.constant 0 : index
    %443 = vector.load %arg2[%442, %c0_147] : memref<200x32xf32, #tpu.memory_space<vmem>>, vector<1x32xf32>
    %444 = arith.mulf %443, %443 : vector<1x32xf32>
    %cst_148 = arith.constant dense<0.000000e+00> : vector<1xf32>
    %445 = vector.multi_reduction <add>, %444, %cst_148 [1] : vector<1x32xf32> to vector<1xf32>
    %446 = vector.shape_cast %445 : vector<1xf32> to vector<1x1xf32>
    %cst_149 = arith.constant 1.000000e+00 : f32
    %447 = vector.broadcast %cst_149 : f32 to vector<1x1xf32>
    %448 = arith.cmpf ogt, %446, %447 : vector<1x1xf32>
    %449 = math.rsqrt %446 : vector<1x1xf32>
    %cst_150 = arith.constant 1.000000e+00 : f32
    %450 = vector.broadcast %cst_150 : f32 to vector<1x1xf32>
    %451 = arith.mulf %450, %449 : vector<1x1xf32>
    %cst_151 = arith.constant 1.000000e+00 : f32
    %452 = vector.broadcast %cst_151 : f32 to vector<1x1xf32>
    %453 = arith.select %448, %451, %452 : vector<1x1xi1>, vector<1x1xf32>
    %454 = vector.broadcast %453 : vector<1x1xf32> to vector<1x32xf32>
    %455 = arith.mulf %443, %454 : vector<1x32xf32>
    %456 = arith.addf %440, %455 : vector<1x32xf32>
    %c28 = arith.constant 28 : index
    %457 = memref.load %arg1[%c28] : memref<48xi32, #tpu.memory_space<smem>>
    %458 = arith.index_cast %457 : i32 to index
    %c0_152 = arith.constant 0 : index
    %459 = vector.load %arg2[%458, %c0_152] : memref<200x32xf32, #tpu.memory_space<vmem>>, vector<1x32xf32>
    %460 = arith.mulf %459, %459 : vector<1x32xf32>
    %cst_153 = arith.constant dense<0.000000e+00> : vector<1xf32>
    %461 = vector.multi_reduction <add>, %460, %cst_153 [1] : vector<1x32xf32> to vector<1xf32>
    %462 = vector.shape_cast %461 : vector<1xf32> to vector<1x1xf32>
    %cst_154 = arith.constant 1.000000e+00 : f32
    %463 = vector.broadcast %cst_154 : f32 to vector<1x1xf32>
    %464 = arith.cmpf ogt, %462, %463 : vector<1x1xf32>
    %465 = math.rsqrt %462 : vector<1x1xf32>
    %cst_155 = arith.constant 1.000000e+00 : f32
    %466 = vector.broadcast %cst_155 : f32 to vector<1x1xf32>
    %467 = arith.mulf %466, %465 : vector<1x1xf32>
    %cst_156 = arith.constant 1.000000e+00 : f32
    %468 = vector.broadcast %cst_156 : f32 to vector<1x1xf32>
    %469 = arith.select %464, %467, %468 : vector<1x1xi1>, vector<1x1xf32>
    %470 = vector.broadcast %469 : vector<1x1xf32> to vector<1x32xf32>
    %471 = arith.mulf %459, %470 : vector<1x32xf32>
    %472 = arith.addf %456, %471 : vector<1x32xf32>
    %c29 = arith.constant 29 : index
    %473 = memref.load %arg1[%c29] : memref<48xi32, #tpu.memory_space<smem>>
    %474 = arith.index_cast %473 : i32 to index
    %c0_157 = arith.constant 0 : index
    %475 = vector.load %arg2[%474, %c0_157] : memref<200x32xf32, #tpu.memory_space<vmem>>, vector<1x32xf32>
    %476 = arith.mulf %475, %475 : vector<1x32xf32>
    %cst_158 = arith.constant dense<0.000000e+00> : vector<1xf32>
    %477 = vector.multi_reduction <add>, %476, %cst_158 [1] : vector<1x32xf32> to vector<1xf32>
    %478 = vector.shape_cast %477 : vector<1xf32> to vector<1x1xf32>
    %cst_159 = arith.constant 1.000000e+00 : f32
    %479 = vector.broadcast %cst_159 : f32 to vector<1x1xf32>
    %480 = arith.cmpf ogt, %478, %479 : vector<1x1xf32>
    %481 = math.rsqrt %478 : vector<1x1xf32>
    %cst_160 = arith.constant 1.000000e+00 : f32
    %482 = vector.broadcast %cst_160 : f32 to vector<1x1xf32>
    %483 = arith.mulf %482, %481 : vector<1x1xf32>
    %cst_161 = arith.constant 1.000000e+00 : f32
    %484 = vector.broadcast %cst_161 : f32 to vector<1x1xf32>
    %485 = arith.select %480, %483, %484 : vector<1x1xi1>, vector<1x1xf32>
    %486 = vector.broadcast %485 : vector<1x1xf32> to vector<1x32xf32>
    %487 = arith.mulf %475, %486 : vector<1x32xf32>
    %488 = arith.addf %472, %487 : vector<1x32xf32>
    %c4_162 = arith.constant 4 : index
    %c0_163 = arith.constant 0 : index
    %489 = vector.load %arg6[%c4_162, %c0_163] : memref<8x32xf32, #tpu.memory_space<vmem>>, vector<1x32xf32>
    tpu.vector_store %arg6[%c4_162, %c0_163], %488 {strides = array<i32>} : memref<8x32xf32, #tpu.memory_space<vmem>>, vector<1x32xf32>,
    %cst_164 = arith.constant 0.000000e+00 : f32
    %490 = vector.broadcast %cst_164 : f32 to vector<1x32xf32>
    %c30 = arith.constant 30 : index
    %491 = memref.load %arg1[%c30] : memref<48xi32, #tpu.memory_space<smem>>
    %492 = arith.index_cast %491 : i32 to index
    %c0_165 = arith.constant 0 : index
    %493 = vector.load %arg2[%492, %c0_165] : memref<200x32xf32, #tpu.memory_space<vmem>>, vector<1x32xf32>
    %494 = arith.mulf %493, %493 : vector<1x32xf32>
    %cst_166 = arith.constant dense<0.000000e+00> : vector<1xf32>
    %495 = vector.multi_reduction <add>, %494, %cst_166 [1] : vector<1x32xf32> to vector<1xf32>
    %496 = vector.shape_cast %495 : vector<1xf32> to vector<1x1xf32>
    %cst_167 = arith.constant 1.000000e+00 : f32
    %497 = vector.broadcast %cst_167 : f32 to vector<1x1xf32>
    %498 = arith.cmpf ogt, %496, %497 : vector<1x1xf32>
    %499 = math.rsqrt %496 : vector<1x1xf32>
    %cst_168 = arith.constant 1.000000e+00 : f32
    %500 = vector.broadcast %cst_168 : f32 to vector<1x1xf32>
    %501 = arith.mulf %500, %499 : vector<1x1xf32>
    %cst_169 = arith.constant 1.000000e+00 : f32
    %502 = vector.broadcast %cst_169 : f32 to vector<1x1xf32>
    %503 = arith.select %498, %501, %502 : vector<1x1xi1>, vector<1x1xf32>
    %504 = vector.broadcast %503 : vector<1x1xf32> to vector<1x32xf32>
    %505 = arith.mulf %493, %504 : vector<1x32xf32>
    %506 = arith.addf %490, %505 : vector<1x32xf32>
    %c31 = arith.constant 31 : index
    %507 = memref.load %arg1[%c31] : memref<48xi32, #tpu.memory_space<smem>>
    %508 = arith.index_cast %507 : i32 to index
    %c0_170 = arith.constant 0 : index
    %509 = vector.load %arg2[%508, %c0_170] : memref<200x32xf32, #tpu.memory_space<vmem>>, vector<1x32xf32>
    %510 = arith.mulf %509, %509 : vector<1x32xf32>
    %cst_171 = arith.constant dense<0.000000e+00> : vector<1xf32>
    %511 = vector.multi_reduction <add>, %510, %cst_171 [1] : vector<1x32xf32> to vector<1xf32>
    %512 = vector.shape_cast %511 : vector<1xf32> to vector<1x1xf32>
    %cst_172 = arith.constant 1.000000e+00 : f32
    %513 = vector.broadcast %cst_172 : f32 to vector<1x1xf32>
    %514 = arith.cmpf ogt, %512, %513 : vector<1x1xf32>
    %515 = math.rsqrt %512 : vector<1x1xf32>
    %cst_173 = arith.constant 1.000000e+00 : f32
    %516 = vector.broadcast %cst_173 : f32 to vector<1x1xf32>
    %517 = arith.mulf %516, %515 : vector<1x1xf32>
    %cst_174 = arith.constant 1.000000e+00 : f32
    %518 = vector.broadcast %cst_174 : f32 to vector<1x1xf32>
    %519 = arith.select %514, %517, %518 : vector<1x1xi1>, vector<1x1xf32>
    %520 = vector.broadcast %519 : vector<1x1xf32> to vector<1x32xf32>
    %521 = arith.mulf %509, %520 : vector<1x32xf32>
    %522 = arith.addf %506, %521 : vector<1x32xf32>
    %c32 = arith.constant 32 : index
    %523 = memref.load %arg1[%c32] : memref<48xi32, #tpu.memory_space<smem>>
    %524 = arith.index_cast %523 : i32 to index
    %c0_175 = arith.constant 0 : index
    %525 = vector.load %arg2[%524, %c0_175] : memref<200x32xf32, #tpu.memory_space<vmem>>, vector<1x32xf32>
    %526 = arith.mulf %525, %525 : vector<1x32xf32>
    %cst_176 = arith.constant dense<0.000000e+00> : vector<1xf32>
    %527 = vector.multi_reduction <add>, %526, %cst_176 [1] : vector<1x32xf32> to vector<1xf32>
    %528 = vector.shape_cast %527 : vector<1xf32> to vector<1x1xf32>
    %cst_177 = arith.constant 1.000000e+00 : f32
    %529 = vector.broadcast %cst_177 : f32 to vector<1x1xf32>
    %530 = arith.cmpf ogt, %528, %529 : vector<1x1xf32>
    %531 = math.rsqrt %528 : vector<1x1xf32>
    %cst_178 = arith.constant 1.000000e+00 : f32
    %532 = vector.broadcast %cst_178 : f32 to vector<1x1xf32>
    %533 = arith.mulf %532, %531 : vector<1x1xf32>
    %cst_179 = arith.constant 1.000000e+00 : f32
    %534 = vector.broadcast %cst_179 : f32 to vector<1x1xf32>
    %535 = arith.select %530, %533, %534 : vector<1x1xi1>, vector<1x1xf32>
    %536 = vector.broadcast %535 : vector<1x1xf32> to vector<1x32xf32>
    %537 = arith.mulf %525, %536 : vector<1x32xf32>
    %538 = arith.addf %522, %537 : vector<1x32xf32>
    %c33 = arith.constant 33 : index
    %539 = memref.load %arg1[%c33] : memref<48xi32, #tpu.memory_space<smem>>
    %540 = arith.index_cast %539 : i32 to index
    %c0_180 = arith.constant 0 : index
    %541 = vector.load %arg2[%540, %c0_180] : memref<200x32xf32, #tpu.memory_space<vmem>>, vector<1x32xf32>
    %542 = arith.mulf %541, %541 : vector<1x32xf32>
    %cst_181 = arith.constant dense<0.000000e+00> : vector<1xf32>
    %543 = vector.multi_reduction <add>, %542, %cst_181 [1] : vector<1x32xf32> to vector<1xf32>
    %544 = vector.shape_cast %543 : vector<1xf32> to vector<1x1xf32>
    %cst_182 = arith.constant 1.000000e+00 : f32
    %545 = vector.broadcast %cst_182 : f32 to vector<1x1xf32>
    %546 = arith.cmpf ogt, %544, %545 : vector<1x1xf32>
    %547 = math.rsqrt %544 : vector<1x1xf32>
    %cst_183 = arith.constant 1.000000e+00 : f32
    %548 = vector.broadcast %cst_183 : f32 to vector<1x1xf32>
    %549 = arith.mulf %548, %547 : vector<1x1xf32>
    %cst_184 = arith.constant 1.000000e+00 : f32
    %550 = vector.broadcast %cst_184 : f32 to vector<1x1xf32>
    %551 = arith.select %546, %549, %550 : vector<1x1xi1>, vector<1x1xf32>
    %552 = vector.broadcast %551 : vector<1x1xf32> to vector<1x32xf32>
    %553 = arith.mulf %541, %552 : vector<1x32xf32>
    %554 = arith.addf %538, %553 : vector<1x32xf32>
    %c34 = arith.constant 34 : index
    %555 = memref.load %arg1[%c34] : memref<48xi32, #tpu.memory_space<smem>>
    %556 = arith.index_cast %555 : i32 to index
    %c0_185 = arith.constant 0 : index
    %557 = vector.load %arg2[%556, %c0_185] : memref<200x32xf32, #tpu.memory_space<vmem>>, vector<1x32xf32>
    %558 = arith.mulf %557, %557 : vector<1x32xf32>
    %cst_186 = arith.constant dense<0.000000e+00> : vector<1xf32>
    %559 = vector.multi_reduction <add>, %558, %cst_186 [1] : vector<1x32xf32> to vector<1xf32>
    %560 = vector.shape_cast %559 : vector<1xf32> to vector<1x1xf32>
    %cst_187 = arith.constant 1.000000e+00 : f32
    %561 = vector.broadcast %cst_187 : f32 to vector<1x1xf32>
    %562 = arith.cmpf ogt, %560, %561 : vector<1x1xf32>
    %563 = math.rsqrt %560 : vector<1x1xf32>
    %cst_188 = arith.constant 1.000000e+00 : f32
    %564 = vector.broadcast %cst_188 : f32 to vector<1x1xf32>
    %565 = arith.mulf %564, %563 : vector<1x1xf32>
    %cst_189 = arith.constant 1.000000e+00 : f32
    %566 = vector.broadcast %cst_189 : f32 to vector<1x1xf32>
    %567 = arith.select %562, %565, %566 : vector<1x1xi1>, vector<1x1xf32>
    %568 = vector.broadcast %567 : vector<1x1xf32> to vector<1x32xf32>
    %569 = arith.mulf %557, %568 : vector<1x32xf32>
    %570 = arith.addf %554, %569 : vector<1x32xf32>
    %c35 = arith.constant 35 : index
    %571 = memref.load %arg1[%c35] : memref<48xi32, #tpu.memory_space<smem>>
    %572 = arith.index_cast %571 : i32 to index
    %c0_190 = arith.constant 0 : index
    %573 = vector.load %arg2[%572, %c0_190] : memref<200x32xf32, #tpu.memory_space<vmem>>, vector<1x32xf32>
    %574 = arith.mulf %573, %573 : vector<1x32xf32>
    %cst_191 = arith.constant dense<0.000000e+00> : vector<1xf32>
    %575 = vector.multi_reduction <add>, %574, %cst_191 [1] : vector<1x32xf32> to vector<1xf32>
    %576 = vector.shape_cast %575 : vector<1xf32> to vector<1x1xf32>
    %cst_192 = arith.constant 1.000000e+00 : f32
    %577 = vector.broadcast %cst_192 : f32 to vector<1x1xf32>
    %578 = arith.cmpf ogt, %576, %577 : vector<1x1xf32>
    %579 = math.rsqrt %576 : vector<1x1xf32>
    %cst_193 = arith.constant 1.000000e+00 : f32
    %580 = vector.broadcast %cst_193 : f32 to vector<1x1xf32>
    %581 = arith.mulf %580, %579 : vector<1x1xf32>
    %cst_194 = arith.constant 1.000000e+00 : f32
    %582 = vector.broadcast %cst_194 : f32 to vector<1x1xf32>
    %583 = arith.select %578, %581, %582 : vector<1x1xi1>, vector<1x1xf32>
    %584 = vector.broadcast %583 : vector<1x1xf32> to vector<1x32xf32>
    %585 = arith.mulf %573, %584 : vector<1x32xf32>
    %586 = arith.addf %570, %585 : vector<1x32xf32>
    %c5_195 = arith.constant 5 : index
    %c0_196 = arith.constant 0 : index
    %587 = vector.load %arg6[%c5_195, %c0_196] : memref<8x32xf32, #tpu.memory_space<vmem>>, vector<1x32xf32>
    tpu.vector_store %arg6[%c5_195, %c0_196], %586 {strides = array<i32>} : memref<8x32xf32, #tpu.memory_space<vmem>>, vector<1x32xf32>,
    %cst_197 = arith.constant 0.000000e+00 : f32
    %588 = vector.broadcast %cst_197 : f32 to vector<1x32xf32>
    %c36 = arith.constant 36 : index
    %589 = memref.load %arg1[%c36] : memref<48xi32, #tpu.memory_space<smem>>
    %590 = arith.index_cast %589 : i32 to index
    %c0_198 = arith.constant 0 : index
    %591 = vector.load %arg2[%590, %c0_198] : memref<200x32xf32, #tpu.memory_space<vmem>>, vector<1x32xf32>
    %592 = arith.mulf %591, %591 : vector<1x32xf32>
    %cst_199 = arith.constant dense<0.000000e+00> : vector<1xf32>
    %593 = vector.multi_reduction <add>, %592, %cst_199 [1] : vector<1x32xf32> to vector<1xf32>
    %594 = vector.shape_cast %593 : vector<1xf32> to vector<1x1xf32>
    %cst_200 = arith.constant 1.000000e+00 : f32
    %595 = vector.broadcast %cst_200 : f32 to vector<1x1xf32>
    %596 = arith.cmpf ogt, %594, %595 : vector<1x1xf32>
    %597 = math.rsqrt %594 : vector<1x1xf32>
    %cst_201 = arith.constant 1.000000e+00 : f32
    %598 = vector.broadcast %cst_201 : f32 to vector<1x1xf32>
    %599 = arith.mulf %598, %597 : vector<1x1xf32>
    %cst_202 = arith.constant 1.000000e+00 : f32
    %600 = vector.broadcast %cst_202 : f32 to vector<1x1xf32>
    %601 = arith.select %596, %599, %600 : vector<1x1xi1>, vector<1x1xf32>
    %602 = vector.broadcast %601 : vector<1x1xf32> to vector<1x32xf32>
    %603 = arith.mulf %591, %602 : vector<1x32xf32>
    %604 = arith.addf %588, %603 : vector<1x32xf32>
    %c37 = arith.constant 37 : index
    %605 = memref.load %arg1[%c37] : memref<48xi32, #tpu.memory_space<smem>>
    %606 = arith.index_cast %605 : i32 to index
    %c0_203 = arith.constant 0 : index
    %607 = vector.load %arg2[%606, %c0_203] : memref<200x32xf32, #tpu.memory_space<vmem>>, vector<1x32xf32>
    %608 = arith.mulf %607, %607 : vector<1x32xf32>
    %cst_204 = arith.constant dense<0.000000e+00> : vector<1xf32>
    %609 = vector.multi_reduction <add>, %608, %cst_204 [1] : vector<1x32xf32> to vector<1xf32>
    %610 = vector.shape_cast %609 : vector<1xf32> to vector<1x1xf32>
    %cst_205 = arith.constant 1.000000e+00 : f32
    %611 = vector.broadcast %cst_205 : f32 to vector<1x1xf32>
    %612 = arith.cmpf ogt, %610, %611 : vector<1x1xf32>
    %613 = math.rsqrt %610 : vector<1x1xf32>
    %cst_206 = arith.constant 1.000000e+00 : f32
    %614 = vector.broadcast %cst_206 : f32 to vector<1x1xf32>
    %615 = arith.mulf %614, %613 : vector<1x1xf32>
    %cst_207 = arith.constant 1.000000e+00 : f32
    %616 = vector.broadcast %cst_207 : f32 to vector<1x1xf32>
    %617 = arith.select %612, %615, %616 : vector<1x1xi1>, vector<1x1xf32>
    %618 = vector.broadcast %617 : vector<1x1xf32> to vector<1x32xf32>
    %619 = arith.mulf %607, %618 : vector<1x32xf32>
    %620 = arith.addf %604, %619 : vector<1x32xf32>
    %c38 = arith.constant 38 : index
    %621 = memref.load %arg1[%c38] : memref<48xi32, #tpu.memory_space<smem>>
    %622 = arith.index_cast %621 : i32 to index
    %c0_208 = arith.constant 0 : index
    %623 = vector.load %arg2[%622, %c0_208] : memref<200x32xf32, #tpu.memory_space<vmem>>, vector<1x32xf32>
    %624 = arith.mulf %623, %623 : vector<1x32xf32>
    %cst_209 = arith.constant dense<0.000000e+00> : vector<1xf32>
    %625 = vector.multi_reduction <add>, %624, %cst_209 [1] : vector<1x32xf32> to vector<1xf32>
    %626 = vector.shape_cast %625 : vector<1xf32> to vector<1x1xf32>
    %cst_210 = arith.constant 1.000000e+00 : f32
    %627 = vector.broadcast %cst_210 : f32 to vector<1x1xf32>
    %628 = arith.cmpf ogt, %626, %627 : vector<1x1xf32>
    %629 = math.rsqrt %626 : vector<1x1xf32>
    %cst_211 = arith.constant 1.000000e+00 : f32
    %630 = vector.broadcast %cst_211 : f32 to vector<1x1xf32>
    %631 = arith.mulf %630, %629 : vector<1x1xf32>
    %cst_212 = arith.constant 1.000000e+00 : f32
    %632 = vector.broadcast %cst_212 : f32 to vector<1x1xf32>
    %633 = arith.select %628, %631, %632 : vector<1x1xi1>, vector<1x1xf32>
    %634 = vector.broadcast %633 : vector<1x1xf32> to vector<1x32xf32>
    %635 = arith.mulf %623, %634 : vector<1x32xf32>
    %636 = arith.addf %620, %635 : vector<1x32xf32>
    %c39 = arith.constant 39 : index
    %637 = memref.load %arg1[%c39] : memref<48xi32, #tpu.memory_space<smem>>
    %638 = arith.index_cast %637 : i32 to index
    %c0_213 = arith.constant 0 : index
    %639 = vector.load %arg2[%638, %c0_213] : memref<200x32xf32, #tpu.memory_space<vmem>>, vector<1x32xf32>
    %640 = arith.mulf %639, %639 : vector<1x32xf32>
    %cst_214 = arith.constant dense<0.000000e+00> : vector<1xf32>
    %641 = vector.multi_reduction <add>, %640, %cst_214 [1] : vector<1x32xf32> to vector<1xf32>
    %642 = vector.shape_cast %641 : vector<1xf32> to vector<1x1xf32>
    %cst_215 = arith.constant 1.000000e+00 : f32
    %643 = vector.broadcast %cst_215 : f32 to vector<1x1xf32>
    %644 = arith.cmpf ogt, %642, %643 : vector<1x1xf32>
    %645 = math.rsqrt %642 : vector<1x1xf32>
    %cst_216 = arith.constant 1.000000e+00 : f32
    %646 = vector.broadcast %cst_216 : f32 to vector<1x1xf32>
    %647 = arith.mulf %646, %645 : vector<1x1xf32>
    %cst_217 = arith.constant 1.000000e+00 : f32
    %648 = vector.broadcast %cst_217 : f32 to vector<1x1xf32>
    %649 = arith.select %644, %647, %648 : vector<1x1xi1>, vector<1x1xf32>
    %650 = vector.broadcast %649 : vector<1x1xf32> to vector<1x32xf32>
    %651 = arith.mulf %639, %650 : vector<1x32xf32>
    %652 = arith.addf %636, %651 : vector<1x32xf32>
    %c40 = arith.constant 40 : index
    %653 = memref.load %arg1[%c40] : memref<48xi32, #tpu.memory_space<smem>>
    %654 = arith.index_cast %653 : i32 to index
    %c0_218 = arith.constant 0 : index
    %655 = vector.load %arg2[%654, %c0_218] : memref<200x32xf32, #tpu.memory_space<vmem>>, vector<1x32xf32>
    %656 = arith.mulf %655, %655 : vector<1x32xf32>
    %cst_219 = arith.constant dense<0.000000e+00> : vector<1xf32>
    %657 = vector.multi_reduction <add>, %656, %cst_219 [1] : vector<1x32xf32> to vector<1xf32>
    %658 = vector.shape_cast %657 : vector<1xf32> to vector<1x1xf32>
    %cst_220 = arith.constant 1.000000e+00 : f32
    %659 = vector.broadcast %cst_220 : f32 to vector<1x1xf32>
    %660 = arith.cmpf ogt, %658, %659 : vector<1x1xf32>
    %661 = math.rsqrt %658 : vector<1x1xf32>
    %cst_221 = arith.constant 1.000000e+00 : f32
    %662 = vector.broadcast %cst_221 : f32 to vector<1x1xf32>
    %663 = arith.mulf %662, %661 : vector<1x1xf32>
    %cst_222 = arith.constant 1.000000e+00 : f32
    %664 = vector.broadcast %cst_222 : f32 to vector<1x1xf32>
    %665 = arith.select %660, %663, %664 : vector<1x1xi1>, vector<1x1xf32>
    %666 = vector.broadcast %665 : vector<1x1xf32> to vector<1x32xf32>
    %667 = arith.mulf %655, %666 : vector<1x32xf32>
    %668 = arith.addf %652, %667 : vector<1x32xf32>
    %c41 = arith.constant 41 : index
    %669 = memref.load %arg1[%c41] : memref<48xi32, #tpu.memory_space<smem>>
    %670 = arith.index_cast %669 : i32 to index
    %c0_223 = arith.constant 0 : index
    %671 = vector.load %arg2[%670, %c0_223] : memref<200x32xf32, #tpu.memory_space<vmem>>, vector<1x32xf32>
    %672 = arith.mulf %671, %671 : vector<1x32xf32>
    %cst_224 = arith.constant dense<0.000000e+00> : vector<1xf32>
    %673 = vector.multi_reduction <add>, %672, %cst_224 [1] : vector<1x32xf32> to vector<1xf32>
    %674 = vector.shape_cast %673 : vector<1xf32> to vector<1x1xf32>
    %cst_225 = arith.constant 1.000000e+00 : f32
    %675 = vector.broadcast %cst_225 : f32 to vector<1x1xf32>
    %676 = arith.cmpf ogt, %674, %675 : vector<1x1xf32>
    %677 = math.rsqrt %674 : vector<1x1xf32>
    %cst_226 = arith.constant 1.000000e+00 : f32
    %678 = vector.broadcast %cst_226 : f32 to vector<1x1xf32>
    %679 = arith.mulf %678, %677 : vector<1x1xf32>
    %cst_227 = arith.constant 1.000000e+00 : f32
    %680 = vector.broadcast %cst_227 : f32 to vector<1x1xf32>
    %681 = arith.select %676, %679, %680 : vector<1x1xi1>, vector<1x1xf32>
    %682 = vector.broadcast %681 : vector<1x1xf32> to vector<1x32xf32>
    %683 = arith.mulf %671, %682 : vector<1x32xf32>
    %684 = arith.addf %668, %683 : vector<1x32xf32>
    %c6_228 = arith.constant 6 : index
    %c0_229 = arith.constant 0 : index
    %685 = vector.load %arg6[%c6_228, %c0_229] : memref<8x32xf32, #tpu.memory_space<vmem>>, vector<1x32xf32>
    tpu.vector_store %arg6[%c6_228, %c0_229], %684 {strides = array<i32>} : memref<8x32xf32, #tpu.memory_space<vmem>>, vector<1x32xf32>,
    %cst_230 = arith.constant 0.000000e+00 : f32
    %686 = vector.broadcast %cst_230 : f32 to vector<1x32xf32>
    %c42 = arith.constant 42 : index
    %687 = memref.load %arg1[%c42] : memref<48xi32, #tpu.memory_space<smem>>
    %688 = arith.index_cast %687 : i32 to index
    %c0_231 = arith.constant 0 : index
    %689 = vector.load %arg2[%688, %c0_231] : memref<200x32xf32, #tpu.memory_space<vmem>>, vector<1x32xf32>
    %690 = arith.mulf %689, %689 : vector<1x32xf32>
    %cst_232 = arith.constant dense<0.000000e+00> : vector<1xf32>
    %691 = vector.multi_reduction <add>, %690, %cst_232 [1] : vector<1x32xf32> to vector<1xf32>
    %692 = vector.shape_cast %691 : vector<1xf32> to vector<1x1xf32>
    %cst_233 = arith.constant 1.000000e+00 : f32
    %693 = vector.broadcast %cst_233 : f32 to vector<1x1xf32>
    %694 = arith.cmpf ogt, %692, %693 : vector<1x1xf32>
    %695 = math.rsqrt %692 : vector<1x1xf32>
    %cst_234 = arith.constant 1.000000e+00 : f32
    %696 = vector.broadcast %cst_234 : f32 to vector<1x1xf32>
    %697 = arith.mulf %696, %695 : vector<1x1xf32>
    %cst_235 = arith.constant 1.000000e+00 : f32
    %698 = vector.broadcast %cst_235 : f32 to vector<1x1xf32>
    %699 = arith.select %694, %697, %698 : vector<1x1xi1>, vector<1x1xf32>
    %700 = vector.broadcast %699 : vector<1x1xf32> to vector<1x32xf32>
    %701 = arith.mulf %689, %700 : vector<1x32xf32>
    %702 = arith.addf %686, %701 : vector<1x32xf32>
    %c43 = arith.constant 43 : index
    %703 = memref.load %arg1[%c43] : memref<48xi32, #tpu.memory_space<smem>>
    %704 = arith.index_cast %703 : i32 to index
    %c0_236 = arith.constant 0 : index
    %705 = vector.load %arg2[%704, %c0_236] : memref<200x32xf32, #tpu.memory_space<vmem>>, vector<1x32xf32>
    %706 = arith.mulf %705, %705 : vector<1x32xf32>
    %cst_237 = arith.constant dense<0.000000e+00> : vector<1xf32>
    %707 = vector.multi_reduction <add>, %706, %cst_237 [1] : vector<1x32xf32> to vector<1xf32>
    %708 = vector.shape_cast %707 : vector<1xf32> to vector<1x1xf32>
    %cst_238 = arith.constant 1.000000e+00 : f32
    %709 = vector.broadcast %cst_238 : f32 to vector<1x1xf32>
    %710 = arith.cmpf ogt, %708, %709 : vector<1x1xf32>
    %711 = math.rsqrt %708 : vector<1x1xf32>
    %cst_239 = arith.constant 1.000000e+00 : f32
    %712 = vector.broadcast %cst_239 : f32 to vector<1x1xf32>
    %713 = arith.mulf %712, %711 : vector<1x1xf32>
    %cst_240 = arith.constant 1.000000e+00 : f32
    %714 = vector.broadcast %cst_240 : f32 to vector<1x1xf32>
    %715 = arith.select %710, %713, %714 : vector<1x1xi1>, vector<1x1xf32>
    %716 = vector.broadcast %715 : vector<1x1xf32> to vector<1x32xf32>
    %717 = arith.mulf %705, %716 : vector<1x32xf32>
    %718 = arith.addf %702, %717 : vector<1x32xf32>
    %c44 = arith.constant 44 : index
    %719 = memref.load %arg1[%c44] : memref<48xi32, #tpu.memory_space<smem>>
    %720 = arith.index_cast %719 : i32 to index
    %c0_241 = arith.constant 0 : index
    %721 = vector.load %arg2[%720, %c0_241] : memref<200x32xf32, #tpu.memory_space<vmem>>, vector<1x32xf32>
    %722 = arith.mulf %721, %721 : vector<1x32xf32>
    %cst_242 = arith.constant dense<0.000000e+00> : vector<1xf32>
    %723 = vector.multi_reduction <add>, %722, %cst_242 [1] : vector<1x32xf32> to vector<1xf32>
    %724 = vector.shape_cast %723 : vector<1xf32> to vector<1x1xf32>
    %cst_243 = arith.constant 1.000000e+00 : f32
    %725 = vector.broadcast %cst_243 : f32 to vector<1x1xf32>
    %726 = arith.cmpf ogt, %724, %725 : vector<1x1xf32>
    %727 = math.rsqrt %724 : vector<1x1xf32>
    %cst_244 = arith.constant 1.000000e+00 : f32
    %728 = vector.broadcast %cst_244 : f32 to vector<1x1xf32>
    %729 = arith.mulf %728, %727 : vector<1x1xf32>
    %cst_245 = arith.constant 1.000000e+00 : f32
    %730 = vector.broadcast %cst_245 : f32 to vector<1x1xf32>
    %731 = arith.select %726, %729, %730 : vector<1x1xi1>, vector<1x1xf32>
    %732 = vector.broadcast %731 : vector<1x1xf32> to vector<1x32xf32>
    %733 = arith.mulf %721, %732 : vector<1x32xf32>
    %734 = arith.addf %718, %733 : vector<1x32xf32>
    %c45 = arith.constant 45 : index
    %735 = memref.load %arg1[%c45] : memref<48xi32, #tpu.memory_space<smem>>
    %736 = arith.index_cast %735 : i32 to index
    %c0_246 = arith.constant 0 : index
    %737 = vector.load %arg2[%736, %c0_246] : memref<200x32xf32, #tpu.memory_space<vmem>>, vector<1x32xf32>
    %738 = arith.mulf %737, %737 : vector<1x32xf32>
    %cst_247 = arith.constant dense<0.000000e+00> : vector<1xf32>
    %739 = vector.multi_reduction <add>, %738, %cst_247 [1] : vector<1x32xf32> to vector<1xf32>
    %740 = vector.shape_cast %739 : vector<1xf32> to vector<1x1xf32>
    %cst_248 = arith.constant 1.000000e+00 : f32
    %741 = vector.broadcast %cst_248 : f32 to vector<1x1xf32>
    %742 = arith.cmpf ogt, %740, %741 : vector<1x1xf32>
    %743 = math.rsqrt %740 : vector<1x1xf32>
    %cst_249 = arith.constant 1.000000e+00 : f32
    %744 = vector.broadcast %cst_249 : f32 to vector<1x1xf32>
    %745 = arith.mulf %744, %743 : vector<1x1xf32>
    %cst_250 = arith.constant 1.000000e+00 : f32
    %746 = vector.broadcast %cst_250 : f32 to vector<1x1xf32>
    %747 = arith.select %742, %745, %746 : vector<1x1xi1>, vector<1x1xf32>
    %748 = vector.broadcast %747 : vector<1x1xf32> to vector<1x32xf32>
    %749 = arith.mulf %737, %748 : vector<1x32xf32>
    %750 = arith.addf %734, %749 : vector<1x32xf32>
    %c46 = arith.constant 46 : index
    %751 = memref.load %arg1[%c46] : memref<48xi32, #tpu.memory_space<smem>>
    %752 = arith.index_cast %751 : i32 to index
    %c0_251 = arith.constant 0 : index
    %753 = vector.load %arg2[%752, %c0_251] : memref<200x32xf32, #tpu.memory_space<vmem>>, vector<1x32xf32>
    %754 = arith.mulf %753, %753 : vector<1x32xf32>
    %cst_252 = arith.constant dense<0.000000e+00> : vector<1xf32>
    %755 = vector.multi_reduction <add>, %754, %cst_252 [1] : vector<1x32xf32> to vector<1xf32>
    %756 = vector.shape_cast %755 : vector<1xf32> to vector<1x1xf32>
    %cst_253 = arith.constant 1.000000e+00 : f32
    %757 = vector.broadcast %cst_253 : f32 to vector<1x1xf32>
    %758 = arith.cmpf ogt, %756, %757 : vector<1x1xf32>
    %759 = math.rsqrt %756 : vector<1x1xf32>
    %cst_254 = arith.constant 1.000000e+00 : f32
    %760 = vector.broadcast %cst_254 : f32 to vector<1x1xf32>
    %761 = arith.mulf %760, %759 : vector<1x1xf32>
    %cst_255 = arith.constant 1.000000e+00 : f32
    %762 = vector.broadcast %cst_255 : f32 to vector<1x1xf32>
    %763 = arith.select %758, %761, %762 : vector<1x1xi1>, vector<1x1xf32>
    %764 = vector.broadcast %763 : vector<1x1xf32> to vector<1x32xf32>
    %765 = arith.mulf %753, %764 : vector<1x32xf32>
    %766 = arith.addf %750, %765 : vector<1x32xf32>
    %c47 = arith.constant 47 : index
    %767 = memref.load %arg1[%c47] : memref<48xi32, #tpu.memory_space<smem>>
    %768 = arith.index_cast %767 : i32 to index
    %c0_256 = arith.constant 0 : index
    %769 = vector.load %arg2[%768, %c0_256] : memref<200x32xf32, #tpu.memory_space<vmem>>, vector<1x32xf32>
    %770 = arith.mulf %769, %769 : vector<1x32xf32>
    %cst_257 = arith.constant dense<0.000000e+00> : vector<1xf32>
    %771 = vector.multi_reduction <add>, %770, %cst_257 [1] : vector<1x32xf32> to vector<1xf32>
    %772 = vector.shape_cast %771 : vector<1xf32> to vector<1x1xf32>
    %cst_258 = arith.constant 1.000000e+00 : f32
    %773 = vector.broadcast %cst_258 : f32 to vector<1x1xf32>
    %774 = arith.cmpf ogt, %772, %773 : vector<1x1xf32>
    %775 = math.rsqrt %772 : vector<1x1xf32>
    %cst_259 = arith.constant 1.000000e+00 : f32
    %776 = vector.broadcast %cst_259 : f32 to vector<1x1xf32>
    %777 = arith.mulf %776, %775 : vector<1x1xf32>
    %cst_260 = arith.constant 1.000000e+00 : f32
    %778 = vector.broadcast %cst_260 : f32 to vector<1x1xf32>
    %779 = arith.select %774, %777, %778 : vector<1x1xi1>, vector<1x1xf32>
    %780 = vector.broadcast %779 : vector<1x1xf32> to vector<1x32xf32>
    %781 = arith.mulf %769, %780 : vector<1x32xf32>
    %782 = arith.addf %766, %781 : vector<1x32xf32>
    %c7_261 = arith.constant 7 : index
    %c0_262 = arith.constant 0 : index
    %783 = vector.load %arg6[%c7_261, %c0_262] : memref<8x32xf32, #tpu.memory_space<vmem>>, vector<1x32xf32>
    tpu.vector_store %arg6[%c7_261, %c0_262], %782 {strides = array<i32>} : memref<8x32xf32, #tpu.memory_space<vmem>>, vector<1x32xf32>,
    %c0_263 = arith.constant 0 : index
    %c0_264 = arith.constant 0 : index
    %784 = vector.load %arg6[%c0_263, %c0_264] : memref<8x32xf32, #tpu.memory_space<vmem>>, vector<8x32xf32>
    %c0_265 = arith.constant 0 : index
    %c0_266 = arith.constant 0 : index
    %785 = vector.load %arg3[%c0_265, %c0_266] : memref<32x256xf32, #tpu.memory_space<vmem>>, vector<32x256xf32>
    %cst_267 = arith.constant dense<0.000000e+00> : vector<8x256xf32>
    %786 = tpu.matmul %784, %785, %cst_267 {dimension_numbers = #tpu.dot_dimension_numbers<[1], [0], [0], [1], [0, 0, 1, 1], [], []>} : vector<8x32xf32>, vector<32x256xf32>, vector<8x256xf32> -> vector<8x256xf32>
    %c0_268 = arith.constant 0 : index
    %c0_269 = arith.constant 0 : index
    %787 = vector.load %arg4[%c0_268, %c0_269] : memref<1x256xf32, #tpu.memory_space<vmem>>, vector<1x256xf32>
    %788 = vector.broadcast %787 : vector<1x256xf32> to vector<8x256xf32>
    %789 = arith.addf %786, %788 : vector<8x256xf32>
    %c0_270 = arith.constant 0 : index
    %c0_271 = arith.constant 0 : index
    %790 = vector.load %arg5[%c0_270, %c0_271] : memref<8x256xf32, #tpu.memory_space<vmem>>, vector<8x256xf32>
    tpu.vector_store %arg5[%c0_270, %c0_271], %789 {strides = array<i32>} : memref<8x256xf32, #tpu.memory_space<vmem>>, vector<8x256xf32>,
    return
  }
  func.func @transform_0(%arg0: i32, %arg1: memref<48xi32, #tpu.memory_space<smem>>) -> (i32, i32) {
    %c0_i32 = arith.constant 0 : i32
    %c0_i32_0 = arith.constant 0 : i32
    %c0_i32_1 = arith.constant 0 : i32
    return %c0_i32, %c0_i32_0 : i32, i32
  }
  func.func @transform_1(%arg0: i32, %arg1: memref<48xi32, #tpu.memory_space<smem>>) -> (i32, i32) {
    %c0_i32 = arith.constant 0 : i32
    %c0_i32_0 = arith.constant 0 : i32
    return %c0_i32, %arg0 : i32, i32
  }
  func.func @transform_2(%arg0: i32, %arg1: memref<48xi32, #tpu.memory_space<smem>>) -> (i32, i32) {
    %c0_i32 = arith.constant 0 : i32
    %c0_i32_0 = arith.constant 0 : i32
    return %c0_i32, %arg0 : i32, i32
  }
  func.func @transform_3(%arg0: i32, %arg1: memref<48xi32, #tpu.memory_space<smem>>) -> (i32, i32) {
    %c0_i32 = arith.constant 0 : i32
    %c0_i32_0 = arith.constant 0 : i32
    return %c0_i32, %arg0 : i32, i32
  }
}

</mosaic_0001>

<bundles_post_ra>
// kernel: tpu_custom_call.1
= control target key start
LH: loop header
LB: loop body
LE: loop exit
PB: predicated region body
PF: predicated region fallthrough
CT: control target
= control target key end

     0   :  { %s1748_s0 = inlined_call_operand.vmem [shape: s32[48], index: 0, kind: input, shape index: {}]   ;;  %s1749_s1 = inlined_call_operand.vmem [shape: f32[200,32], index: 1, kind: input, shape index: {}]   ;;  %s1750_s2 = inlined_call_operand.vmem [shape: f32[32,256], index: 2, kind: input, shape index: {}]   ;;  %s1751_s3 = inlined_call_operand.vmem [shape: f32[1,256], index: 3, kind: input, shape index: {}]   ;;  %s1752_s4 = inlined_call_operand.hbm [shape: f32[8,256], index: 4, kind: output, shape index: {}]  }
   0x1   :  { %s9_s17 = sshll.u32 %s1748_s0, 4  ;;  %s10_s17 = int_to_ptr.vmem [resolvable:$true] %s9_s17 }
   0x2   :  { %s922_s18 = scalar_lea.vmem %s10_s17, 16  ;;  %p927_p1 = scmp.lt.s32.totalorder %s10_s17, %s10_s17 }
   0x3   :  { %p923_p0 = scmp.ne.s32.totalorder %s10_s17, %s922_s18  ;;  %p928_p2 = scmp.lt.s32.totalorder %s922_s18, %s922_s18 }
   0x5   :  { %p929_p3 = por %p928_p2, %p927_p1 }
   0x7   :  { %p930_p4 = pnand %p929_p3, %p923_p0 }
   0x9   :  { %933 = shalt.err (!%p930_p4)  }
   0xa   :  { %s960_s19 = smov [#allocation4]  }
   0xb   :  { %12 = dma.vmem_to_smem %s10_s17, 16, %s960_s19, [#allocation3] }
   0xc   :  { %956 = dma.done.wait [#allocation3], 16 }
   0xd   :  { %957 = vsyncadd [#allocation3], 4294967280 }
   0xe   :  { %14 = sfence }
   0xf   :  { %s772_s20 = sld [smem:[#allocation4 + $0x6]]  ;;  %s22_s21 = sld [smem:[#allocation4]] }
  0x10   :  { %s773_s22 = sld [smem:[#allocation4 + $0x7]]  ;;  %s767_s23 = sld [smem:[#allocation4 + $0x1]] }
  0x11   :  { %15 = vsyncpa [#allocation6], 0  ;;  %s779_s24 = sld [smem:[#allocation4 + $0xd]]  ;;  %s778_s0 = sld [smem:[#allocation4 + $0xc]]  ;;  %vm26_vm0 = vcmask 253952  }
  0x12   :  { %s991_s25 = sld [smem:[#allocation4 + $0x13]]  ;;  %s993_s26 = sld [smem:[#allocation4 + $0x12]] }
  0x13   :  { %s995_s27 = sld [smem:[#allocation4 + $0x19]]  ;;  %s997_s28 = sld [smem:[#allocation4 + $0x18]] }
  0x14   :  { %s999_s29 = sld [smem:[#allocation4 + $0x1f]]  ;;  %s1069_s11 = sld [smem:[#allocation4 + $0x25]] }
  0x15   :  { %s97_s6 = scalar_lea.vmem %s1749_s1, %s772_s20  ;;  %s23_s9 = scalar_lea.vmem %s1749_s1, %s22_s21 }
  0x16   :  { %v1007_v0 = vld [vmem:[%s97_s6] sm:$0x1]  ;;  %s109_s12 = scalar_lea.vmem %s1749_s1, %s773_s22  ;;  %s36_s15 = scalar_lea.vmem %s1749_s1, %s767_s23 }
  0x17   :  { %v1009_v1 = vld [vmem:[%s23_s9] sm:$0x1]  ;;  %v99_v2 = vmul.f32 %v1007_v0, %v1007_v0  ;;  %s182_s18 = scalar_lea.vmem %s1749_s1, %s779_s24  ;;  %s170_s21 = scalar_lea.vmem %s1749_s1, %s778_s0 }
  0x18   :  { %v25_v3 = vmul.f32 %v1009_v1, %v1009_v1  ;;  %v1021_v4 = vld [vmem:[%s109_s12] sm:$0x1]  ;;  %s1039_s22 = sld [smem:[#allocation4 + $0x1e]]  ;;  %s255_s0 = scalar_lea.vmem %s1749_s1, %s991_s25 }
  0x19   :  { %v1023_v5 = vld [vmem:[%s36_s15] sm:$0x1]  ;;  %v111_v6 = vmul.f32 %v1021_v4, %v1021_v4  ;;  %v100_v10 = vsel %vm26_vm0, %v99_v2, 0.0  ;;  %s243_s6 = scalar_lea.vmem %s1749_s1, %s993_s26  ;;  %s328_s7 = scalar_lea.vmem %s1749_s1, %s995_s27 }
  0x1a   :  { %v38_v7 = vmul.f32 %v1023_v5, %v1023_v5  ;;  %v1035_v8 = vld [vmem:[%s182_s18] sm:$0x1]  ;;  %v27_v11 = vsel %vm26_vm0, %v25_v3, 0.0  ;;  %101 = vadd.xlane.f32.xlu1 %v100_v10  ;;  %s316_s10 = scalar_lea.vmem %s1749_s1, %s997_s28  ;;  %s1071_s12 = sld [smem:[#allocation4 + $0x24]] }
  0x1b   :  { %v1037_v9 = vld [vmem:[%s170_s21] sm:$0x1]  ;;  %28 = vadd.xlane.f32.xlu0 %v27_v11  ;;  %v112_v12 = vsel %vm26_vm0, %v111_v6, 0.0  ;;  %v184_v14 = vmul.f32 %v1035_v8, %v1035_v8  ;;  %s401_s13 = scalar_lea.vmem %s1749_s1, %s999_s29  ;;  %s1091_s17 = sld [smem:[#allocation4 + $0x2b]] }
  0x1c   :  { %v39_v13 = vsel %vm26_vm0, %v38_v7, 0.0  ;;  %v172_v15 = vmul.f32 %v1037_v9, %v1037_v9  ;;  %v1057_v16 = vld [vmem:[%s255_s0] sm:$0x1]  ;;  %s1093_s18 = sld [smem:[#allocation4 + $0x2a]]  ;;  %s1105_s29 = sld [smem:[#allocation4 + $0x8]] }
  0x1d   :  { %v1059_v17 = vld [vmem:[%s243_s6] sm:$0x1]  ;;  %v185_v18 = vsel %vm26_vm0, %v184_v14, 0.0  ;;  %v257_v20 = vmul.f32 %v1057_v16, %v1057_v16  ;;  %s1107_s19 = sld [smem:[#allocation4 + $0x2]]  ;;  %s1123_s30 = sld [smem:[#allocation4 + $0x14]] }
  0x1e   :  { %113 = vadd.xlane.f32.xlu1 %v112_v12  ;;  %v173_v19 = vsel %vm26_vm0, %v172_v15, 0.0  ;;  %v245_v21 = vmul.f32 %v1059_v17, %v1059_v17  ;;  %v1079_v22 = vld [vmem:[%s328_s7] sm:$0x1]  ;;  %s389_s16 = scalar_lea.vmem %s1749_s1, %s1039_s22  ;;  %s474_s22 = scalar_lea.vmem %s1749_s1, %s1069_s11 }
  0x1f   :  { %40 = vadd.xlane.f32.xlu0 %v39_v13  ;;  %v1081_v23 = vld [vmem:[%s316_s10] sm:$0x1]  ;;  %v258_v24 = vsel %vm26_vm0, %v257_v20, 0.0  ;;  %v330_v26 = vmul.f32 %v1079_v22, %v1079_v22  ;;  %s1129_s5 = sld [smem:[#allocation4 + $0xe]]  ;;  %s1145_s10 = sld [smem:[#allocation4 + $0x20]] }
  0x20   :  { %v246_v25 = vsel %vm26_vm0, %v245_v21, 0.0  ;;  %v318_v27 = vmul.f32 %v1081_v23, %v1081_v23  ;;  %v1101_v28 = vld [vmem:[%s401_s13] sm:$0x1]  ;;  %s462_s0 = scalar_lea.vmem %s1749_s1, %s1071_s12  ;;  %s1151_s11 = sld [smem:[#allocation4 + $0x1a]] }
  0x21   :  { %v1103_v29 = vld [vmem:[%s389_s16] sm:$0x1]  ;;  %v331_v30 = vsel %vm26_vm0, %v330_v26, 0.0  ;;  %v403_v32 = vmul.f32 %v1101_v28, %v1101_v28  ;;  %s547_s26 = scalar_lea.vmem %s1749_s1, %s1091_s17  ;;  %s1167_s16 = sld [smem:[#allocation4 + $0x2c]] }
  0x22   :  { %186 = vadd.xlane.f32.xlu1 %v185_v18  ;;  %v319_v31 = vsel %vm26_vm0, %v318_v27, 0.0  ;;  %v391_v33 = vmul.f32 %v1103_v29, %v1103_v29  ;;  %v1125_v34 = vld [vmem:[%s474_s22] sm:$0x1]  ;;  %s535_s9 = scalar_lea.vmem %s1749_s1, %s1093_s18  ;;  %s121_s28 = scalar_lea.vmem %s1749_s1, %s1105_s29 }
  0x23   :  { %174 = vadd.xlane.f32.xlu0 %v173_v19  ;;  %v1127_v35 = vld [vmem:[%s462_s0] sm:$0x1]  ;;  %v404_v36 = vsel %vm26_vm0, %v403_v32, 0.0  ;;  %v476_v38 = vmul.f32 %v1125_v34, %v1125_v34  ;;  %s48_s15 = scalar_lea.vmem %s1749_s1, %s1107_s19  ;;  %s1173_s17 = sld [smem:[#allocation4 + $0x26]] }
  0x24   :  { %v392_v37 = vsel %vm26_vm0, %v391_v33, 0.0  ;;  %v464_v39 = vmul.f32 %v1127_v35, %v1127_v35  ;;  %v1147_v40 = vld [vmem:[%s547_s26] sm:$0x1]  ;;  %s267_s19 = scalar_lea.vmem %s1749_s1, %s1123_s30  ;;  %s1201_s25 = sld [smem:[#allocation4 + $0x9]] }
  0x25   :  { %v1149_v41 = vld [vmem:[%s535_s9] sm:$0x1]  ;;  %v477_v42 = vsel %vm26_vm0, %v476_v38, 0.0  ;;  %v549_v44 = vmul.f32 %v1147_v40, %v1147_v40  ;;  %s194_s22 = scalar_lea.vmem %s1749_s1, %s1129_s5  ;;  %s413_s0 = scalar_lea.vmem %s1749_s1, %s1145_s10 }
  0x26   :  { %259 = vadd.xlane.f32.xlu1 %v258_v24  ;;  %v465_v43 = vsel %vm26_vm0, %v464_v39, 0.0  ;;  %v537_v45 = vmul.f32 %v1149_v41, %v1149_v41  ;;  %v1169_v46 = vld [vmem:[%s121_s28] sm:$0x1]  ;;  %s340_s6 = scalar_lea.vmem %s1749_s1, %s1151_s11  ;;  %s1203_s26 = sld [smem:[#allocation4 + $0x3]] }
  0x27   :  { %247 = vadd.xlane.f32.xlu0 %v246_v25  ;;  %v1171_v47 = vld [vmem:[%s48_s15] sm:$0x1]  ;;  %v550_v48 = vsel %vm26_vm0, %v549_v44, 0.0  ;;  %v123_v50 = vmul.f32 %v1169_v46, %v1169_v46  ;;  %s559_s9 = scalar_lea.vmem %s1749_s1, %s1167_s16  ;;  %s1223_s27 = sld [smem:[#allocation4 + $0x15]] }
  0x28   :  { %v538_v49 = vsel %vm26_vm0, %v537_v45, 0.0  ;;  %v50_v51 = vmul.f32 %v1171_v47, %v1171_v47  ;;  %v1189_v52 = vld [vmem:[%s267_s19] sm:$0x1]  ;;  %s1225_s28 = sld [smem:[#allocation4 + $0xf]]  ;;  %s1237_s13 = sld [smem:[#allocation4 + $0x21]] }
  0x29   :  { %v1191_v53 = vld [vmem:[%s194_s22] sm:$0x1]  ;;  %v124_v54 = vsel %vm26_vm0, %v123_v50, 0.0  ;;  %v269_v56 = vmul.f32 %v1189_v52, %v1189_v52  ;;  %s486_s12 = scalar_lea.vmem %s1749_s1, %s1173_s17  ;;  %s1239_s14 = sld [smem:[#allocation4 + $0x1b]] }
  0x2a   :  { %332 = vadd.xlane.f32.xlu1 %v331_v30  ;;  %v51_v55 = vsel %vm26_vm0, %v50_v51, 0.0  ;;  %v196_v57 = vmul.f32 %v1191_v53, %v1191_v53  ;;  %v1211_v58 = vld [vmem:[%s413_s0] sm:$0x1]  ;;  %s133_s17 = scalar_lea.vmem %s1749_s1, %s1201_s25  ;;  %s1255_s20 = sld [smem:[#allocation4 + $0x2d]] }
  0x2b   :  { %320 = vadd.xlane.f32.xlu0 %v319_v31  ;;  %v1213_v59 = vld [vmem:[%s340_s6] sm:$0x1]  ;;  %v270_v60 = vsel %vm26_vm0, %v269_v56, 0.0  ;;  %v415_v62 = vmul.f32 %v1211_v58, %v1211_v58  ;;  %s1261_s21 = sld [smem:[#allocation4 + $0x27]]  ;;  %s1277_s6 = sld [smem:[#allocation4 + $0xa]] }
  0x2c   :  { %v197_v61 = vsel %vm26_vm0, %v196_v57, 0.0  ;;  %v342_v63 = vmul.f32 %v1213_v59, %v1213_v59  ;;  %v1233_v2 = vld [vmem:[%s559_s9] sm:$0x1]  ;;  %s60_s19 = scalar_lea.vmem %s1749_s1, %s1203_s26  ;;  %s1283_s25 = sld [smem:[#allocation4 + $0x4]] }
  0x2d   :  { %v1235_v3 = vld [vmem:[%s486_s12] sm:$0x1]  ;;  %v416_v6 = vsel %vm26_vm0, %v415_v62, 0.0  ;;  %v561_v10 = vmul.f32 %v1233_v2, %v1233_v2  ;;  %s279_s24 = scalar_lea.vmem %s1749_s1, %s1223_s27  ;;  %s1299_s12 = sld [smem:[#allocation4 + $0x16]] }
  0x2e   :  { %405 = vadd.xlane.f32.xlu1 %v404_v36  ;;  %v343_v7 = vsel %vm26_vm0, %v342_v63, 0.0  ;;  %v488_v11 = vmul.f32 %v1235_v3, %v1235_v3  ;;  %v1257_v12 = vld [vmem:[%s133_s17] sm:$0x1]  ;;  %s206_s5 = scalar_lea.vmem %s1749_s1, %s1225_s28  ;;  %s425_s8 = scalar_lea.vmem %s1749_s1, %s1237_s13 }
  0x2f   :  { %393 = vadd.xlane.f32.xlu0 %v392_v37  ;;  %v1259_v13 = vld [vmem:[%s60_s19] sm:$0x1]  ;;  %v562_v14 = vsel %vm26_vm0, %v561_v10, 0.0  ;;  %v135_v18 = vmul.f32 %v1257_v12, %v1257_v12  ;;  %s352_s11 = scalar_lea.vmem %s1749_s1, %s1239_s14  ;;  %s1305_s27 = sld [smem:[#allocation4 + $0x10]] }
  0x30   :  { %v489_v15 = vsel %vm26_vm0, %v488_v11, 0.0  ;;  %v62_v19 = vmul.f32 %v1259_v13, %v1259_v13  ;;  %v1279_v20 = vld [vmem:[%s279_s24] sm:$0x1]  ;;  %s571_s14 = scalar_lea.vmem %s1749_s1, %s1255_s20  ;;  %s1333_s23 = sld [smem:[#allocation4 + $0x22]] }
  0x31   :  { %v1281_v21 = vld [vmem:[%s206_s5] sm:$0x1]  ;;  %v136_v24 = vsel %vm26_vm0, %v135_v18, 0.0  ;;  %v281_v26 = vmul.f32 %v1279_v20, %v1279_v20  ;;  %s498_s17 = scalar_lea.vmem %s1749_s1, %s1261_s21  ;;  %s145_s19 = scalar_lea.vmem %s1749_s1, %s1277_s6 }
  0x32   :  { %478 = vadd.xlane.f32.xlu1 %v477_v42  ;;  %v63_v25 = vsel %vm26_vm0, %v62_v19, 0.0  ;;  %v208_v27 = vmul.f32 %v1281_v21, %v1281_v21  ;;  %v1301_v30 = vld [vmem:[%s425_s8] sm:$0x1]  ;;  %s72_s22 = scalar_lea.vmem %s1749_s1, %s1283_s25  ;;  %s1335_s24 = sld [smem:[#allocation4 + $0x1c]] }
  0x33   :  { %466 = vadd.xlane.f32.xlu0 %v465_v43  ;;  %v1303_v31 = vld [vmem:[%s352_s11] sm:$0x1]  ;;  %v282_v32 = vsel %vm26_vm0, %v281_v26, 0.0  ;;  %v427_v36 = vmul.f32 %v1301_v30, %v1301_v30  ;;  %s291_s5 = scalar_lea.vmem %s1749_s1, %s1299_s12  ;;  %s1355_s7 = sld [smem:[#allocation4 + $0x2e]] }
  0x34   :  { %v209_v33 = vsel %vm26_vm0, %v208_v27, 0.0  ;;  %v354_v37 = vmul.f32 %v1303_v31, %v1303_v31  ;;  %v1321_v38 = vld [vmem:[%s571_s14] sm:$0x1]  ;;  %s1357_s8 = sld [smem:[#allocation4 + $0x28]]  ;;  %s1369_s9 = sld [smem:[#allocation4 + $0xb]] }
  0x35   :  { %v1323_v39 = vld [vmem:[%s498_s17] sm:$0x1]  ;;  %v428_v42 = vsel %vm26_vm0, %v427_v36, 0.0  ;;  %v573_v44 = vmul.f32 %v1321_v38, %v1321_v38  ;;  %s218_s26 = scalar_lea.vmem %s1749_s1, %s1305_s27  ;;  %s1371_s10 = sld [smem:[#allocation4 + $0x5]] }
  0x36   :  { %551 = vadd.xlane.f32.xlu1 %v550_v48  ;;  %1760 = vst [vmem:[#allocation9_spill] sm:$0xff] %v1323_v39  ;;  %v355_v43 = vsel %vm26_vm0, %v354_v37, 0.0  ;;  %v500_v45 = vmul.f32 %v1323_v39, %v1323_v39  ;;  %v1343_v48 = vld [vmem:[%s145_s19] sm:$0x1]  ;;  %s437_s27 = scalar_lea.vmem %s1749_s1, %s1333_s23  ;;  %s1387_s15 = sld [smem:[#allocation4 + $0x17]] }
  0x37   :  { %539 = vadd.xlane.f32.xlu0 %v538_v49  ;;  %v1345_v49 = vld [vmem:[%s72_s22] sm:$0x1]  ;;  %v574_v50 = vsel %vm26_vm0, %v573_v44, 0.0  ;;  %s1393_s16 = sld [smem:[#allocation4 + $0x11]]  ;;  %s1409_s22 = sld [smem:[#allocation4 + $0x23]] }
  0x38   :  { %v501_v51 = vsel %vm26_vm0, %v500_v45, 0.0  ;;  %v1365_v56 = vld [vmem:[%s291_s5] sm:$0x1]  ;;  %s364_s14 = scalar_lea.vmem %s1749_s1, %s1335_s24  ;;  %s1415_s23 = sld [smem:[#allocation4 + $0x1d]] }
  0x39   :  { %v1367_v57 = vld [vmem:[%s218_s26] sm:$0x1]  ;;  %v293_v62 = vmul.f32 %v1365_v56, %v1365_v56  ;;  %s583_s29 = scalar_lea.vmem %s1749_s1, %s1355_s7  ;;  %s1431_s26 = sld [smem:[#allocation4 + $0x2f]] }
  0x3a   :  { %125 = vadd.xlane.f32.xlu1 %v124_v54  ;;  %v147_v54 = vmul.f32 %v1343_v48, %v1343_v48  ;;  %v220_v63 = vmul.f32 %v1367_v57, %v1367_v57  ;;  %s510_s21 = scalar_lea.vmem %s1749_s1, %s1357_s8  ;;  %v1411_v18 = vld [vmem:[%s583_s29] sm:$0x1]  ;;  %s157_s30 = scalar_lea.vmem %s1749_s1, %s1369_s9 }
  0x3b   :  { %52 = vadd.xlane.f32.xlu0 %v51_v55  ;;  %v74_v55 = vmul.f32 %v1345_v49, %v1345_v49  ;;  %v294_v10 = vsel %vm26_vm0, %v293_v62, 0.0  ;;  %1761 = vst [vmem:[#allocation10_spill] sm:$0xff] %v1411_v18  ;;  %v1413_v19 = vld [vmem:[%s510_s21] sm:$0x1]  ;;  %s84_s25 = scalar_lea.vmem %s1749_s1, %s1371_s10  ;;  %v585_v26 = vmul.f32 %v1411_v18, %v1411_v18  ;;  %s1437_s7 = sld [smem:[#allocation4 + $0x29]] }
  0x3c   :  { %v221_v11 = vsel %vm26_vm0, %v220_v63, 0.0  ;;  %1762 = vst [vmem:[#allocation11_spill] sm:$0xff] %v1413_v19  ;;  %v512_v27 = vmul.f32 %v1413_v19, %v1413_v19  ;;  %s303_s10 = scalar_lea.vmem %s1749_s1, %s1387_s15  ;;  %s962_s13 = smov [#allocation5]  }
  0x3d   :  { %v586_v36 = vsel %vm26_vm0, %v585_v26, 0.0  ;;  %v1453_v44 = vld [vmem:[%s303_s10] sm:$0x1] }
  0x3e   :  { %271 = vadd.xlane.f32.xlu1 %v270_v60  ;;  %v148_v60 = vsel %vm26_vm0, %v147_v54, 0.0  ;;  %v513_v37 = vsel %vm26_vm0, %v512_v27, 0.0  ;;  %s376_s17 = scalar_lea.vmem %s1749_s1, %s1415_s23  ;;  %v305_v54 = vmul.f32 %v1453_v44, %v1453_v44 }
  0x3f   :  { %198 = vadd.xlane.f32.xlu0 %v197_v61  ;;  %v75_v61 = vsel %vm26_vm0, %v74_v55, 0.0  ;;  %s595_s19 = scalar_lea.vmem %s1749_s1, %s1431_s26 }
  0x40   :  { %v306_v62 = vsel %vm26_vm0, %v305_v54, 0.0  ;;  %v610_v54 = vld [vmem:[%s1750_s2 + $0x10] sm:$0xff] }
  0x42   :  { %417 = vadd.xlane.f32.xlu1 %v416_v6  ;;  %v1389_v6 = vld [vmem:[%s437_s27] sm:$0x1]  ;;  %s230_s27 = scalar_lea.vmem %s1749_s1, %s1393_s16 }
  0x43   :  { %344 = vadd.xlane.f32.xlu0 %v343_v7  ;;  %v1391_v7 = vld [vmem:[%s364_s14] sm:$0x1]  ;;  %s449_s14 = scalar_lea.vmem %s1749_s1, %s1409_s22  ;;  %s522_s22 = scalar_lea.vmem %s1749_s1, %s1437_s7 }
  0x44   :  { %v1455_v45 = vld [vmem:[%s230_s27] sm:$0x1] }
  0x45   :  { %v232_v55 = vmul.f32 %v1455_v45, %v1455_v45 }
  0x46   :  { %563 = vadd.xlane.f32.xlu1 %v562_v14  ;;  %v439_v14 = vmul.f32 %v1389_v6, %v1389_v6 }
  0x47   :  { %490 = vadd.xlane.f32.xlu0 %v489_v15  ;;  %v366_v15 = vmul.f32 %v1391_v7, %v1391_v7  ;;  %v233_v63 = vsel %vm26_vm0, %v232_v55, 0.0 }
  0x4a   :  { %137 = vadd.xlane.f32.xlu1 %v136_v24  ;;  %v440_v24 = vsel %vm26_vm0, %v439_v14, 0.0  ;;  %v1489_v14 = vld [vmem:[%s595_s19] sm:$0x1] }
  0x4b   :  { %64 = vadd.xlane.f32.xlu0 %v63_v25  ;;  %v367_v25 = vsel %vm26_vm0, %v366_v15, 0.0  ;;  %1765 = vst [vmem:[#allocation14_spill] sm:$0xff] %v1489_v14  ;;  %v1491_v15 = vld [vmem:[%s522_s22] sm:$0x1]  ;;  %v597_v26 = vmul.f32 %v1489_v14, %v1489_v14 }
  0x4c   :  { %1766 = vst [vmem:[#allocation15_spill] sm:$0xff] %v1491_v15  ;;  %v524_v27 = vmul.f32 %v1491_v15, %v1491_v15 }
  0x4e   :  { %283 = vadd.xlane.f32.xlu1 %v282_v32  ;;  %v1433_v32 = vld [vmem:[%s157_s30] sm:$0x1] }
  0x4f   :  { %210 = vadd.xlane.f32.xlu0 %v209_v33  ;;  %v1435_v33 = vld [vmem:[%s84_s25] sm:$0x1] }
  0x52   :  { %429 = vadd.xlane.f32.xlu1 %v428_v42  ;;  %v159_v42 = vmul.f32 %v1433_v32, %v1433_v32 }
  0x53   :  { %356 = vadd.xlane.f32.xlu0 %v355_v43  ;;  %v86_v43 = vmul.f32 %v1435_v33, %v1435_v33 }
  0x56   :  { %575 = vadd.xlane.f32.xlu1 %v574_v50  ;;  %v160_v50 = vsel %vm26_vm0, %v159_v42, 0.0  ;;  %v609_v42 = vld [vmem:[%s1750_s2 + $0x8] sm:$0xff] }
  0x57   :  { %502 = vadd.xlane.f32.xlu0 %v501_v51  ;;  %v87_v51 = vsel %vm26_vm0, %v86_v43, 0.0  ;;  %v611_v43 = vld [vmem:[%s1750_s2 + $0x18] sm:$0xff] }
  0x5a   :  { %149 = vadd.xlane.f32.xlu1 %v148_v60  ;;  %v1471_v60 = vld [vmem:[%s449_s14] sm:$0x1]  ;;  %s711_s14 = sshll.u32 %s962_s13, 4  ;;  %s712_s14 = int_to_ptr.vmem [resolvable:$true] %s711_s14 }
  0x5b   :  { %76 = vadd.xlane.f32.xlu0 %v75_v61  ;;  %1763 = vst [vmem:[#allocation12_spill] sm:$0xff] %v1471_v60  ;;  %v1473_v61 = vld [vmem:[%s376_s17] sm:$0x1]  ;;  %s934_s15 = scalar_lea.vmem %s712_s14, 256  ;;  %p939_p6 = scmp.lt.s32.totalorder %s712_s14, %s712_s14 }
  0x5c   :  { %1764 = vst [vmem:[#allocation13_spill] sm:$0xff] %v1473_v61  ;;  %p935_p5 = scmp.ne.s32.totalorder %s712_s14, %s934_s15  ;;  %p940_p7 = scmp.lt.s32.totalorder %s934_s15, %s934_s15 }
  0x5e   :  { %295 = vadd.xlane.f32.xlu1 %v294_v10  ;;  %v451_v10 = vmul.f32 %v1471_v60, %v1471_v60  ;;  %p941_p8 = por %p940_p7, %p939_p6 }
  0x5f   :  { %222 = vadd.xlane.f32.xlu0 %v221_v11  ;;  %v378_v11 = vmul.f32 %v1473_v61, %v1473_v61 }
  0x60   :  { %p942_p9 = pnand %p941_p8, %p935_p5 }
  0x62   :  { %441 = vadd.xlane.f32.xlu1 %v440_v24  ;;  %v452_v24 = vsel %vm26_vm0, %v451_v10, 0.0  ;;  %v612_v10 = vld [vmem:[%s1750_s2 + $0x20] sm:$0xff] }
  0x63   :  { %368 = vadd.xlane.f32.xlu0 %v367_v25  ;;  %v379_v25 = vsel %vm26_vm0, %v378_v11, 0.0 }
  0x66   :  { %587 = vadd.xlane.f32.xlu1 %v586_v36  ;;  %v598_v36 = vsel %vm26_vm0, %v597_v26, 0.0 }
  0x67   :  { %514 = vadd.xlane.f32.xlu0 %v513_v37  ;;  %v525_v37 = vsel %vm26_vm0, %v524_v27, 0.0 }
  0x6a   :  { %161 = vadd.xlane.f32.xlu1 %v160_v50  ;;  %v815_v50 = vpack.c.bf16 %v611_v43, %v609_v42 }
  0x6b   :  { %88 = vadd.xlane.f32.xlu0 %v87_v51  ;;  %v608_v51 = vld [vmem:[%s1750_s2] sm:$0xff] }
  0x6c   :  { %v817_v55 = vpack.c.bf16 %v610_v54, %v608_v51  ;;  %816 = vmatprep.subr.bf16.mxu0 %v815_v50 }
  0x6e   :  { %307 = vadd.xlane.f32.xlu1 %v306_v62  ;;  %v613_v62 = vld [vmem:[%s1750_s2 + $0x28] sm:$0xff]  ;;  %818 = vmatpush1.bf16.msra.mxu0 %v817_v55 }
  0x6f   :  { %234 = vadd.xlane.f32.xlu0 %v233_v63  ;;  %v615_v63 = vld [vmem:[%s1750_s2 + $0x38] sm:$0xff] }
  0x70   :  { %v819_v11 = vpack.c.bf16 %v615_v63, %v613_v62 }
  0x72   :  { %453 = vadd.xlane.f32.xlu1 %v452_v24  ;;  %v614_v24 = vld [vmem:[%s1750_s2 + $0x30] sm:$0xff]  ;;  %820 = vmatprep.subr.bf16.mxu0 %v819_v11 }
  0x73   :  { %380 = vadd.xlane.f32.xlu0 %v379_v25  ;;  %v961_v25 = vmov 0.0   ;;  %v821_v26 = vpack.c.bf16 %v614_v24, %v612_v10 }
  0x74   :  { %696 = vmatprep.mubr.f32.mxu0 %v961_v25 }
  0x75   :  { %822 = vmatpush1.bf16.msra.mxu0 %v821_v26 }
  0x76   :  { %599 = vadd.xlane.f32.xlu1 %v598_v36 }
  0x77   :  { %526 = vadd.xlane.f32.xlu0 %v525_v37 }
  0xa7   :  { %v102_v27 = vpop.xlane.xlu1 %101 }
  0xa8   :  { %v29_v36 = vpop.xlane.xlu0 %28  ;;  %826 = vrsqrt.f32 %v102_v27  ;;  %vm103_vm1 = vcmp.gt.f32.partialorder %v102_v27, 1.0 }
  0xa9   :  { %828 = vrsqrt.f32 %v29_v36  ;;  %vm30_vm2 = vcmp.gt.f32.partialorder %v29_v36, 1.0 }
  0xab   :  { %v114_v37 = vpop.xlane.xlu1 %113 }
  0xac   :  { %v41_v42 = vpop.xlane.xlu0 %40  ;;  %830 = vrsqrt.f32 %v114_v37  ;;  %vm115_vm3 = vcmp.gt.f32.partialorder %v114_v37, 1.0 }
  0xad   :  { %832 = vrsqrt.f32 %v41_v42  ;;  %vm42_vm4 = vcmp.gt.f32.partialorder %v41_v42, 1.0 }
  0xaf   :  { %v187_v43 = vpop.xlane.xlu1 %186 }
  0xb0   :  { %v175_v50 = vpop.xlane.xlu0 %174  ;;  %834 = vrsqrt.f32 %v187_v43  ;;  %vm188_vm5 = vcmp.gt.f32.partialorder %v187_v43, 1.0 }
  0xb1   :  { %836 = vrsqrt.f32 %v175_v50  ;;  %vm176_vm6 = vcmp.gt.f32.partialorder %v175_v50, 1.0 }
  0xb2   :  { %v827_v51 = vpop.eup %826 }
  0xb3   :  { %v829_v54 = vpop.eup %828  ;;  %v260_v55 = vpop.xlane.xlu1 %259  ;;  %v105_v63 = vsel %vm103_vm1, %v827_v51, 1.0 }
  0xb4   :  { %v248_v62 = vpop.xlane.xlu0 %247  ;;  %838 = vrsqrt.f32 %v260_v55  ;;  %v32_v11 = vsel %vm30_vm2, %v829_v54, 1.0  ;;  %v106_v14 = vmul.f32 %v105_v63, %v1007_v0  ;;  %vm261_vm7 = vcmp.gt.f32.partialorder %v260_v55, 1.0 }
  0xb5   :  { %840 = vrsqrt.f32 %v248_v62  ;;  %v33_v27 = vmul.f32 %v32_v11, %v1009_v1  ;;  %vm249_vm8 = vcmp.gt.f32.partialorder %v248_v62, 1.0 }
  0xb6   :  { %v831_v10 = vpop.eup %830 }
  0xb7   :  { %v833_v24 = vpop.eup %832  ;;  %v117_v25 = vsel %vm115_vm3, %v831_v10, 1.0  ;;  %v333_v26 = vpop.xlane.xlu1 %332 }
  0xb8   :  { %v321_v15 = vpop.xlane.xlu0 %320  ;;  %v118_v61 = vmul.f32 %v117_v25, %v1021_v4  ;;  %v44_v19 = vsel %vm42_vm4, %v833_v24, 1.0  ;;  %842 = vrsqrt.f32 %v333_v26  ;;  %vm334_vm9 = vcmp.gt.f32.partialorder %v333_v26, 1.0 }
  0xb9   :  { %v45_v51 = vmul.f32 %v44_v19, %v1023_v5  ;;  %844 = vrsqrt.f32 %v321_v15  ;;  %vm322_vm10 = vcmp.gt.f32.partialorder %v321_v15, 1.0 }
  0xba   :  { %v835_v36 = vpop.eup %834  ;;  %v1529_v60 = vadd.f32 %v118_v61, %v106_v14 }
  0xbb   :  { %v837_v37 = vpop.eup %836  ;;  %v1531_v54 = vadd.f32 %v45_v51, %v33_v27  ;;  %v190_v42 = vsel %vm188_vm5, %v835_v36, 1.0  ;;  %v406_v10 = vpop.xlane.xlu1 %405 }
  0xbc   :  { %v394_v0 = vpop.xlane.xlu0 %393  ;;  %v191_v4 = vmul.f32 %v190_v42, %v1035_v8  ;;  %v178_v63 = vsel %vm176_vm6, %v837_v37, 1.0  ;;  %846 = vrsqrt.f32 %v406_v10  ;;  %vm407_vm11 = vcmp.gt.f32.partialorder %v406_v10, 1.0 }
  0xbd   :  { %v179_v1 = vmul.f32 %v178_v63, %v1037_v9  ;;  %848 = vrsqrt.f32 %v394_v0  ;;  %vm395_vm12 = vcmp.gt.f32.partialorder %v394_v0, 1.0 }
  0xbe   :  { %v839_v5 = vpop.eup %838 }
  0xbf   :  { %v841_v19 = vpop.eup %840  ;;  %v1535_v61 = vadd.f32 %v191_v4, %v179_v1  ;;  %v263_v14 = vsel %vm261_vm7, %v839_v5, 1.0  ;;  %v479_v43 = vpop.xlane.xlu1 %478 }
  0xc0   :  { %v467_v11 = vpop.xlane.xlu0 %466  ;;  %v264_v50 = vmul.f32 %v263_v14, %v1057_v16  ;;  %v251_v24 = vsel %vm249_vm8, %v841_v19, 1.0  ;;  %850 = vrsqrt.f32 %v479_v43  ;;  %vm480_vm13 = vcmp.gt.f32.partialorder %v479_v43, 1.0 }
  0xc1   :  { %v252_v8 = vmul.f32 %v251_v24, %v1059_v17  ;;  %852 = vrsqrt.f32 %v467_v11  ;;  %vm468_vm14 = vcmp.gt.f32.partialorder %v467_v11, 1.0 }
  0xc2   :  { %v843_v25 = vpop.eup %842 }
  0xc3   :  { %v845_v9 = vpop.eup %844  ;;  %v1539_v27 = vadd.f32 %v264_v50, %v252_v8  ;;  %v336_v55 = vsel %vm334_vm9, %v843_v25, 1.0  ;;  %v552_v51 = vpop.xlane.xlu1 %551 }
  0xc4   :  { %v540_v36 = vpop.xlane.xlu0 %539  ;;  %v337_v62 = vmul.f32 %v336_v55, %v1079_v22  ;;  %v324_v37 = vsel %vm322_vm10, %v845_v9, 1.0  ;;  %854 = vrsqrt.f32 %v552_v51  ;;  %vm553_vm15 = vcmp.gt.f32.partialorder %v552_v51, 1.0 }
  0xc5   :  { %v325_v16 = vmul.f32 %v324_v37, %v1081_v23  ;;  %856 = vrsqrt.f32 %v540_v36  ;;  %vm541_vm1 = vcmp.gt.f32.partialorder %v540_v36, 1.0 }
  0xc6   :  { %v847_v42 = vpop.eup %846 }
  0xc7   :  { %v849_v17 = vpop.eup %848  ;;  %v1543_v4 = vadd.f32 %v337_v62, %v325_v16  ;;  %v409_v26 = vsel %vm407_vm11, %v847_v42, 1.0  ;;  %v126_v63 = vpop.xlane.xlu1 %125 }
  0xc8   :  { %v1545_v1 = vpop.xlane.xlu0 %52  ;;  %v410_v15 = vmul.f32 %v409_v26, %v1101_v28  ;;  %v397_v5 = vsel %vm395_vm12, %v849_v17, 1.0  ;;  %858 = vrsqrt.f32 %v126_v63  ;;  %vm127_vm2 = vcmp.gt.f32.partialorder %v126_v63, 1.0 }
  0xc9   :  { %v398_v22 = vmul.f32 %v397_v5, %v1103_v29  ;;  %860 = vrsqrt.f32 %v1545_v1  ;;  %vm54_vm3 = vcmp.gt.f32.partialorder %v1545_v1, 1.0 }
  0xca   :  { %v851_v19 = vpop.eup %850 }
  0xcb   :  { %v853_v14 = vpop.eup %852  ;;  %v1549_v23 = vadd.f32 %v410_v15, %v398_v22  ;;  %v482_v50 = vsel %vm480_vm13, %v851_v19, 1.0  ;;  %v272_v10 = vpop.xlane.xlu1 %271 }
  0xcc   :  { %v199_v24 = vpop.xlane.xlu0 %198  ;;  %v483_v8 = vmul.f32 %v482_v50, %v1125_v34  ;;  %v470_v0 = vsel %vm468_vm14, %v853_v14, 1.0  ;;  %862 = vrsqrt.f32 %v272_v10  ;;  %vm273_vm4 = vcmp.gt.f32.partialorder %v272_v10, 1.0 }
  0xcd   :  { %v471_v25 = vmul.f32 %v470_v0, %v1127_v35  ;;  %864 = vrsqrt.f32 %v199_v24  ;;  %vm200_vm5 = vcmp.gt.f32.partialorder %v199_v24, 1.0 }
  0xce   :  { %v855_v9 = vpop.eup %854 }
  0xcf   :  { %v857_v28 = vpop.eup %856  ;;  %v1553_v55 = vadd.f32 %v483_v8, %v471_v25  ;;  %v555_v29 = vsel %vm553_vm15, %v855_v9, 1.0  ;;  %v418_v43 = vpop.xlane.xlu1 %417 }
  0xd0   :  { %v345_v62 = vpop.xlane.xlu0 %344  ;;  %v556_v37 = vmul.f32 %v555_v29, %v1147_v40  ;;  %v543_v16 = vsel %vm541_vm1, %v857_v28, 1.0  ;;  %866 = vrsqrt.f32 %v418_v43  ;;  %vm419_vm6 = vcmp.gt.f32.partialorder %v418_v43, 1.0 }
  0xd1   :  { %1767 = vst [vmem:[#allocation16_spill] sm:$0xff] %v1553_v55  ;;  %v544_v11 = vmul.f32 %v543_v16, %v1149_v41  ;;  %868 = vrsqrt.f32 %v345_v62  ;;  %vm346_vm7 = vcmp.gt.f32.partialorder %v345_v62, 1.0 }
  0xd2   :  { %v859_v22 = vpop.eup %858 }
  0xd3   :  { %v1557_v42 = vadd.f32 %v556_v37, %v544_v11  ;;  %v1559_v34 = vpop.xlane.xlu1 %563  ;;  %v861_v50 = vpop.eup %860  ;;  %v129_v9 = vsel %vm127_vm2, %v859_v22, 1.0 }
  0xd4   :  { %v1561_v17 = vpop.xlane.xlu0 %490  ;;  %870 = vrsqrt.f32 %v1559_v34  ;;  %v56_v16 = vsel %vm54_vm3, %v861_v50, 1.0  ;;  %v130_v55 = vmul.f32 %v129_v9, %v1169_v46  ;;  %vm565_vm8 = vcmp.gt.f32.partialorder %v1559_v34, 1.0 }
  0xd5   :  { %872 = vrsqrt.f32 %v1561_v17  ;;  %v57_v18 = vmul.f32 %v56_v16, %v1171_v47  ;;  %vm492_vm9 = vcmp.gt.f32.partialorder %v1561_v17, 1.0 }
  0xd6   :  { %v863_v8 = vpop.eup %862  ;;  %v1610_v47 = vadd.f32 %v130_v55, %v1529_v60 }
  0xd7   :  { %v1563_v35 = vpop.xlane.xlu1 %137  ;;  %v865_v0 = vpop.eup %864  ;;  %v275_v11 = vsel %vm273_vm4, %v863_v8, 1.0 }
  0xd8   :  { %v1565_v51 = vpop.xlane.xlu0 %64  ;;  %874 = vrsqrt.f32 %v1563_v35  ;;  %v202_v63 = vsel %vm200_vm5, %v865_v0, 1.0  ;;  %v276_v8 = vmul.f32 %v275_v11, %v1189_v52  ;;  %v58_v52 = vadd.f32 %v57_v18, %v1531_v54 }
  0xd9   :  { %876 = vrsqrt.f32 %v1565_v51  ;;  %v203_v43 = vmul.f32 %v202_v63, %v1191_v53  ;;  %vm139_vm10 = vcmp.gt.f32.partialorder %v1563_v35, 1.0  ;;  %vm66_vm11 = vcmp.gt.f32.partialorder %v1565_v51, 1.0 }
  0xda   :  { %v867_v25 = vpop.eup %866  ;;  %v277_v55 = vadd.f32 %v276_v8, %v1539_v27 }
  0xdb   :  { %v1567_v26 = vpop.xlane.xlu1 %283  ;;  %v869_v37 = vpop.eup %868  ;;  %v421_v22 = vsel %vm419_vm6, %v867_v25, 1.0 }
  0xdc   :  { %v1569_v36 = vpop.xlane.xlu0 %210  ;;  %878 = vrsqrt.f32 %v1567_v26  ;;  %v348_v39 = vsel %vm346_vm7, %v869_v37, 1.0  ;;  %v422_v62 = vmul.f32 %v421_v22, %v1211_v58  ;;  %vm285_vm12 = vcmp.gt.f32.partialorder %v1567_v26, 1.0 }
  0xdd   :  { %880 = vrsqrt.f32 %v1569_v36  ;;  %v349_v25 = vmul.f32 %v348_v39, %v1213_v59  ;;  %v204_v59 = vadd.f32 %v203_v43, %v1535_v61  ;;  %vm212_vm13 = vcmp.gt.f32.partialorder %v1569_v36, 1.0 }
  0xde   :  { %v871_v1 = vpop.eup %870  ;;  %v423_v18 = vadd.f32 %v422_v62, %v1549_v23 }
  0xdf   :  { %v1572_v40 = vpop.xlane.xlu1 %429  ;;  %v873_v24 = vpop.eup %872  ;;  %v567_v37 = vsel %vm565_vm8, %v871_v1, 1.0  ;;  %v350_v34 = vadd.f32 %v349_v25, %v1543_v4 }
  0xe0   :  { %v1574_v41 = vpop.xlane.xlu0 %356  ;;  %882 = vrsqrt.f32 %v1572_v40  ;;  %v568_v27 = vmul.f32 %v567_v37, %v1233_v2  ;;  %vm431_vm14 = vcmp.gt.f32.partialorder %v1572_v40, 1.0  ;;  %v494_v35 = vsel %vm492_vm9, %v873_v24, 1.0 }
  0xe1   :  { %884 = vrsqrt.f32 %v1574_v41  ;;  %vm358_vm15 = vcmp.gt.f32.partialorder %v1574_v41, 1.0 }
  0xe2   :  { %v875_v46 = vpop.eup %874 }
  0xe3   :  { %v1576_v15 = vpop.xlane.xlu1 %575  ;;  %v877_v0 = vpop.eup %876  ;;  %v141_v61 = vsel %vm139_vm10, %v875_v46, 1.0 }
  0xe4   :  { %v1578_v5 = vpop.xlane.xlu0 %502  ;;  %v68_v51 = vsel %vm66_vm11, %v877_v0, 1.0  ;;  %v142_v63 = vmul.f32 %v141_v61, %v1257_v12  ;;  %vm577_vm3 = vcmp.gt.f32.partialorder %v1576_v15, 1.0 }
  0xe5   :  { %v69_v22 = vmul.f32 %v68_v51, %v1259_v13  ;;  %vm504_vm4 = vcmp.gt.f32.partialorder %v1578_v5, 1.0 }
  0xe6   :  { %v879_v9 = vpop.eup %878  ;;  %v143_v46 = vadd.f32 %v142_v63, %v1610_v47 }
  0xe7   :  { %v1583_v19 = vpop.xlane.xlu1 %149  ;;  %v881_v60 = vpop.eup %880  ;;  %v287_v16 = vsel %vm285_vm12, %v879_v9, 1.0  ;;  %v70_v62 = vadd.f32 %v69_v22, %v58_v52 }
  0xe8   :  { %v1585_v14 = vpop.xlane.xlu0 %76  ;;  %886 = vrsqrt.f32 %v1583_v19  ;;  %v214_v11 = vsel %vm212_vm13, %v881_v60, 1.0  ;;  %v288_v1 = vmul.f32 %v287_v16, %v1279_v20  ;;  %vm151_vm1 = vcmp.gt.f32.partialorder %v1583_v19, 1.0 }
  0xe9   :  { %888 = vrsqrt.f32 %v1585_v14  ;;  %v215_v41 = vmul.f32 %v214_v11, %v1281_v21  ;;  %vm78_vm2 = vcmp.gt.f32.partialorder %v1585_v14, 1.0  ;;  %v1662_v21 = vadd.f32 %v568_v27, %v1557_v42 }
  0xea   :  { %890 = vrsqrt.f32 %v1576_v15  ;;  %v883_v39 = vpop.eup %882 }
  0xeb   :  { %v1592_v28 = vpop.xlane.xlu1 %295  ;;  %892 = vrsqrt.f32 %v1578_v5  ;;  %v885_v54 = vpop.eup %884  ;;  %v433_v4 = vsel %vm431_vm14, %v883_v39, 1.0  ;;  %v216_v25 = vadd.f32 %v215_v41, %v204_v59 }
  0xec   :  { %v1594_v29 = vpop.xlane.xlu0 %222  ;;  %894 = vrsqrt.f32 %v1592_v28  ;;  %v360_v40 = vsel %vm358_vm15, %v885_v54, 1.0  ;;  %v434_v8 = vmul.f32 %v433_v4, %v1301_v30  ;;  %v1665_v30 = vmul.f32 %v494_v35, %v1235_v3 }
  0xed   :  { %896 = vrsqrt.f32 %v1594_v29  ;;  %v361_v13 = vmul.f32 %v360_v40, %v1303_v31  ;;  %v289_v31 = vadd.f32 %v288_v1, %v277_v55  ;;  %vm297_vm5 = vcmp.gt.f32.partialorder %v1592_v28, 1.0 }
  0xee   :  { %v435_v39 = vadd.f32 %v434_v8, %v423_v18  ;;  %vm224_vm6 = vcmp.gt.f32.partialorder %v1594_v29, 1.0 }
  0xef   :  { %v1601_v50 = vpop.xlane.xlu1 %441  ;;  %v1678_v54 = vadd.f32 %v361_v13, %v350_v34 }
  0xf0   :  { %v1603_v10 = vpop.xlane.xlu0 %368  ;;  %898 = vrsqrt.f32 %v1601_v50  ;;  %vm443_vm7 = vcmp.gt.f32.partialorder %v1601_v50, 1.0 }
  0xf1   :  { %900 = vrsqrt.f32 %v1603_v10  ;;  %vm370_vm8 = vcmp.gt.f32.partialorder %v1603_v10, 1.0 }
  0xf2   :  { %v887_v36 = vpop.eup %886 }
  0xf3   :  { %v1618_v53 = vpop.xlane.xlu1 %587  ;;  %v889_v2 = vpop.eup %888  ;;  %v153_v20 = vsel %vm151_vm1, %v887_v36, 1.0 }
  0xf4   :  { %v1620_v58 = vpop.xlane.xlu0 %514  ;;  %v891_v24 = vpop.eup %890  ;;  %v80_v43 = vsel %vm78_vm2, %v889_v2, 1.0  ;;  %v154_v9 = vmul.f32 %v153_v20, %v1343_v48  ;;  %vm589_vm11 = vcmp.gt.f32.partialorder %v1618_v53, 1.0 }
  0xf5   :  { %v893_v19 = vpop.eup %892  ;;  %v81_v42 = vmul.f32 %v80_v43, %v1345_v49  ;;  %v579_v48 = vsel %vm577_vm3, %v891_v24, 1.0  ;;  %vm516_vm13 = vcmp.gt.f32.partialorder %v1620_v58, 1.0  ;;  %v1769_v43 = vld [vmem:[#allocation10_spill] sm:$0xff] }
  0xf6   :  { %v895_v14 = vpop.eup %894  ;;  %v506_v47 = vsel %vm504_vm4, %v893_v19, 1.0  ;;  %v155_v29 = vadd.f32 %v154_v9, %v143_v46  ;;  %v580_v8 = vmul.f32 %v579_v48, %v1321_v38  ;;  %vm628_vm4 = vcmask 261120  }
  0xf7   :  { %v1637_v23 = vpop.xlane.xlu1 %161  ;;  %v897_v0 = vpop.eup %896  ;;  %v299_v49 = vsel %vm297_vm5, %v895_v14, 1.0  ;;  %v82_v59 = vadd.f32 %v81_v42, %v70_v62 }
  0xf8   :  { %v1639_v26 = vpop.xlane.xlu0 %88  ;;  %902 = vrsqrt.f32 %v1637_v23  ;;  %v226_v52 = vsel %vm224_vm6, %v897_v0, 1.0  ;;  %vm163_vm9 = vcmp.gt.f32.partialorder %v1637_v23, 1.0  ;;  %v300_v61 = vmul.f32 %v299_v49, %v1365_v56 }
  0xf9   :  { %904 = vrsqrt.f32 %v1639_v26  ;;  %vm90_vm10 = vcmp.gt.f32.partialorder %v1639_v26, 1.0  ;;  %v227_v11 = vmul.f32 %v226_v52, %v1367_v57  ;;  %v1775_v52 = vld [vmem:[#allocation15_spill] sm:$0xff] }
  0xfa   :  { %906 = vrsqrt.f32 %v1618_v53  ;;  %v899_v60 = vpop.eup %898  ;;  %v301_v50 = vadd.f32 %v300_v61, %v289_v31  ;;  %v1772_v31 = vld [vmem:[#allocation11_spill] sm:$0xff] }
  0xfb   :  { %908 = vrsqrt.f32 %v1620_v58  ;;  %v1655_v12 = vpop.xlane.xlu1 %307  ;;  %v901_v5 = vpop.eup %900  ;;  %v445_v23 = vsel %vm443_vm7, %v899_v60, 1.0  ;;  %v228_v40 = vadd.f32 %v227_v11, %v216_v25  ;;  %v1771_v58 = vld [vmem:[#allocation16_spill] sm:$0xff]  ;;  %v1773_v25 = vld [vmem:[#allocation13_spill] sm:$0xff] }
  0xfc   :  { %v1657_v17 = vpop.xlane.xlu0 %234  ;;  %910 = vrsqrt.f32 %v1655_v12  ;;  %v372_v2 = vsel %vm370_vm8, %v901_v5, 1.0  ;;  %vm309_vm12 = vcmp.gt.f32.partialorder %v1655_v12, 1.0  ;;  %v496_v46 = vadd.f32 %v1665_v30, %v1771_v58 }
  0xfd   :  { %912 = vrsqrt.f32 %v1657_v17  ;;  %vm236_vm14 = vcmp.gt.f32.partialorder %v1657_v17, 1.0  ;;  %v373_v53 = vmul.f32 %v372_v2, %v1391_v7 }
  0xff   :  { %v1674_v3 = vpop.xlane.xlu1 %453  ;;  %v374_v62 = vadd.f32 %v373_v53, %v1678_v54  ;;  %v1774_v54 = vld [vmem:[#allocation14_spill] sm:$0xff] }
 0x100   :  { %v1676_v37 = vpop.xlane.xlu0 %380  ;;  %914 = vrsqrt.f32 %v1674_v3  ;;  %vm455_vm15 = vcmp.gt.f32.partialorder %v1674_v3, 1.0  ;;  %v581_v3 = vadd.f32 %v580_v8, %v1662_v21 }
 0x101   :  { %916 = vrsqrt.f32 %v1676_v37  ;;  %vm382_vm1 = vcmp.gt.f32.partialorder %v1676_v37, 1.0 }
 0x102   :  { %v903_v28 = vpop.eup %902 }
 0x103   :  { %v905_v55 = vpop.eup %904  ;;  %v165_v18 = vsel %vm163_vm9, %v903_v28, 1.0  ;;  %v600_v15 = vpop.xlane.xlu1 %599 }
 0x104   :  { %v1689_v34 = vpop.xlane.xlu0 %526  ;;  %v907_v27 = vpop.eup %906  ;;  %v166_v51 = vmul.f32 %v165_v18, %v1433_v32  ;;  %v92_v16 = vsel %vm90_vm10, %v905_v55, 1.0  ;;  %918 = vrsqrt.f32 %v600_v15  ;;  %vm601_vm2 = vcmp.gt.f32.partialorder %v600_v15, 1.0 }
 0x105   :  { %v909_v36 = vpop.eup %908  ;;  %v93_v4 = vmul.f32 %v92_v16, %v1435_v33  ;;  %920 = vrsqrt.f32 %v1689_v34  ;;  %v446_v33 = vmul.f32 %v445_v23, %v1389_v6  ;;  %v591_v22 = vsel %vm589_vm11, %v907_v27, 1.0  ;;  %v616_v27 = vld [vmem:[%s1751_s3] sm:$0x3] }
 0x106   :  { %v911_v26 = vpop.eup %910  ;;  %v167_v56 = vadd.f32 %v166_v51, %v155_v29  ;;  %v518_v12 = vsel %vm516_vm13, %v909_v36, 1.0  ;;  %v592_v19 = vmul.f32 %v591_v22, %v1769_v43  ;;  %vm528_vm3 = vcmp.gt.f32.partialorder %v1689_v34, 1.0 }
 0x107   :  { %v913_v32 = vpop.eup %912  ;;  %v94_v57 = vadd.f32 %v93_v4, %v82_v59  ;;  %v311_v35 = vsel %vm309_vm12, %v911_v26, 1.0  ;;  %v447_v7 = vadd.f32 %v446_v33, %v435_v39  ;;  %v519_v0 = vmul.f32 %v518_v12, %v1772_v31 }
 0x108   :  { %168 = vst.msk [vmem:[#allocation2 + $0x1] sm:$0x1] %vm26_vm0, %v167_v56  ;;  %v312_v10 = vmul.f32 %v311_v35, %v1453_v44  ;;  %v238_v63 = vsel %vm236_vm14, %v913_v32, 1.0  ;;  %v1768_v44 = vld [vmem:[#allocation9_spill] sm:$0xff]  ;;  %v593_v30 = vadd.f32 %v592_v19, %v581_v3  ;;  %v618_v18 = vlaneseq }
 0x109   :  { %95 = vst.msk [vmem:[#allocation2] sm:$0x1] %vm26_vm0, %v94_v57  ;;  %v239_v1 = vmul.f32 %v238_v63, %v1455_v45  ;;  %v507_v24 = vmul.f32 %v506_v47, %v1768_v44  ;;  %v1770_v45 = vld [vmem:[#allocation12_spill] sm:$0xff] }
 0x10a   :  { %v915_v41 = vpop.eup %914  ;;  %v313_v6 = vadd.f32 %v312_v10, %v301_v50  ;;  %v619_v15 = vshrl.u32 %v618_v18, 7 }
 0x10b   :  { %v917_v17 = vpop.eup %916  ;;  %v240_v13 = vadd.f32 %v239_v1, %v228_v40  ;;  %v457_v20 = vsel %vm455_vm15, %v915_v41, 1.0  ;;  %v508_v39 = vadd.f32 %v507_v24, %v496_v46 }
 0x10c   :  { %314 = vst.msk [vmem:[#allocation2 + $0x3] sm:$0x1] %vm26_vm0, %v313_v6  ;;  %v458_v38 = vmul.f32 %v457_v20, %v1770_v45  ;;  %v384_v14 = vsel %vm382_vm1, %v917_v17, 1.0  ;;  %v620_v34 = vsub.s32 0, %v619_v15  ;;  %v624_v61 = vsub.s32 1, %v619_v15 }
 0x10d   :  { %241 = vst.msk [vmem:[#allocation2 + $0x2] sm:$0x1] %vm26_vm0, %v240_v13  ;;  %v385_v9 = vmul.f32 %v384_v14, %v1773_v25  ;;  %v520_v28 = vadd.f32 %v519_v0, %v508_v39 }
 0x10e   :  { %v919_v42 = vpop.eup %918  ;;  %v459_v37 = vadd.f32 %v458_v38, %v447_v7  ;;  %v621_v51 = vrot.slane %v616_v27, %v620_v34  ;;  %v625_v16 = vrot.slane %v616_v27, %v624_v61 }
 0x10f   :  { %v921_v60 = vpop.eup %920  ;;  %v386_v5 = vadd.f32 %v385_v9, %v374_v62  ;;  %v603_v48 = vsel %vm601_vm2, %v919_v42, 1.0 }
 0x110   :  { %460 = vst.msk [vmem:[#allocation2 + $0x5] sm:$0x1] %vm26_vm0, %v459_v37  ;;  %v604_v47 = vmul.f32 %v603_v48, %v1774_v54  ;;  %v530_v49 = vsel %vm528_vm3, %v921_v60, 1.0 }
 0x111   :  { %387 = vst.msk [vmem:[#allocation2 + $0x4] sm:$0x1] %vm26_vm0, %v386_v5  ;;  %v531_v55 = vmul.f32 %v530_v49, %v1775_v52 }
 0x112   :  { %v605_v21 = vadd.f32 %v604_v47, %v593_v30 }
 0x113   :  { %v532_v29 = vadd.f32 %v531_v55, %v520_v28 }
 0x114   :  { %606 = vst.msk [vmem:[#allocation2 + $0x7] sm:$0x1] %vm26_vm0, %v605_v21 }
 0x115   :  { %533 = vst.msk [vmem:[#allocation2 + $0x6] sm:$0x1] %vm26_vm0, %v532_v29 }
 0x11c   :  { %v607_v59 = vld [vmem:[#allocation2] sm:$0xff] }
 0x11d   :  { %814 = vmatmul.mubr.msk.f32.vlgmr.msra.gmra.mrb[0].mxu0 %vm628_vm4, %v607_v59 }
 0x1f0   :  { %v698_v36 = vpop.f32.mrb[0].mxu0 }
 0x1f1   :  { %v699_v11 = vadd.f32 %v698_v36, %v621_v51  ;;  %v700_v23 = vpop.f32.mrb[1].mxu0 }
 0x1f2   :  { %v701_v4 = vadd.f32 %v700_v23, %v625_v16 }
 0x1f3   :  { %703 = vst [vmem:[#allocation5] sm:$0xff] %v699_v11 }
 0x1f4   :  { %704 = vst [vmem:[#allocation5 + $0x8] sm:$0xff] %v701_v4 }
 0x1f5   :  { %945 = shalt.err (!%p942_p9)
}
 0x1f6   :  { %s946_s17 = scalar_lea.hbm %s1752_s4, 256 }
 0x1f7   :  { %p947_p10 = scmp.ne.s32.totalorder %s1752_s4, %s946_s17  ;;  %p950_p11 = scmp.lt.u32.totalorder %s946_s17, %s1752_s4 }
 0x1f9   :  { %p952_p12 = pnand %p950_p11, %p947_p10 }
 0x1fb   :  { %955 = shalt.err (!%p952_p12)
}
 0x1fc   :  { %714 = dma.vmem_to_hbm [thread:$0]  %s712_s14, 256, %s1752_s4, [#allocation6]  }
 0x1fd   :  { %958 = dma.done.wait [#allocation6], 256  }
 0x1fe   :  { %959 = vsyncadd [#allocation6], 4294967040 }
 0x1ff   :  { %718 = vsyncpa [#allocation6], 1 }

</bundles_post_ra>
